<compile_context>
chip_gen: v5e
topology: v5e:2x2
jax: 0.10.0
libtpu: 0.0.40
codegen_flags: <defaults>
</compile_context>

<pallas_src>
import functools
import math

import jax
import jax.numpy as jnp
from jax.experimental import pallas as pl
from jax.experimental.pallas import tpu as pltpu

_LN_EPS = 1e-5  # PyTorch LayerNorm default


# ---------------------------------------------------------------------------
# In-kernel helpers
# ---------------------------------------------------------------------------
def _layernorm(x, gamma, beta):
    mean = jnp.mean(x, axis=-1, keepdims=True)
    var = jnp.mean(jnp.square(x - mean), axis=-1, keepdims=True)
    return (x - mean) * jax.lax.rsqrt(var + _LN_EPS) * gamma + beta


def _mha(q, k, v, wo, bo, nhead, need_weights):
    """q: (T, D) f32 (scale already folded in), k/v: (S, D) f32.

    Wo is folded into the head loop so every MXU output is lane-dense (T, D).
    Returns (attn_out (T, D) f32, avg_weights (T, S) f32 or None)."""
    T, D = q.shape
    S = k.shape[0]
    hd = D // nhead
    qb = q.astype(jnp.bfloat16)          # cast once, not per head
    kb = k.astype(jnp.bfloat16)
    vb = v.astype(jnp.bfloat16)
    out = jnp.zeros((T, D), jnp.float32)
    w_acc = jnp.zeros((T, S), jnp.float32) if need_weights else None
    # TODO(synk): for hd < 128 a batched (nhead, T, hd) dot_general would fill the MXU
    # contraction depth better; static head loop kept for layout simplicity here.
    for h in range(nhead):               # static loop over heads
        sl = slice(h * hd, (h + 1) * hd)
        # q_h @ k_h^T via dot_general NT form (no materialized transpose).
        s = jax.lax.dot_general(qb[:, sl], kb[:, sl], (((1,), (1,)), ((), ())),
                                preferred_element_type=jnp.float32)       # (T, S)
        s = s - jnp.max(s, axis=-1, keepdims=True)
        p = jnp.exp(s)
        p = p / jnp.sum(p, axis=-1, keepdims=True)   # exact softmax (weights are returned)
        ctx = jnp.dot(p.astype(jnp.bfloat16), vb[:, sl],
                      preferred_element_type=jnp.float32)                 # (T, hd)
        out = out + jnp.dot(ctx.astype(jnp.bfloat16), wo[sl, :],
                            preferred_element_type=jnp.float32)           # lane-dense (T, D)
        if need_weights:
            w_acc = w_acc + p
    out = out + bo
    if need_weights:
        w_acc = w_acc * (1.0 / nhead)
    return out, w_acc


# ---------------------------------------------------------------------------
# Fused decoder-layer kernel: one batch element per grid step
# ---------------------------------------------------------------------------
def decoder_layer_kernel(x_ref, m_ref,
                         g1_ref, be1_ref, wqkv_ref, bqkv_ref, wo1_ref, bo1_ref,
                         g2_ref, be2_ref, wq2_ref, bq2_ref, wkv2_ref, bkv2_ref,
                         wo2_ref, bo2_ref,
                         g3_ref, be3_ref, wf1_ref, bf1_ref, wf2_ref, bf2_ref,
                         o_ref, *w_refs, nhead, need_weights):
    D = x_ref.shape[-1]
    x = x_ref[0].astype(jnp.float32)                                      # (T, D)

    # --- block 1: norm1 + self-attention + residual (onto norm1(tgt)) ---
    xn = _layernorm(x, g1_ref[...], be1_ref[...])
    proj = jnp.dot(xn.astype(jnp.bfloat16), wqkv_ref[...],
                   preferred_element_type=jnp.float32) + bqkv_ref[...]    # (T, 3D)
    q, k, v = proj[:, :D], proj[:, D:2 * D], proj[:, 2 * D:]
    a1, w_self = _mha(q, k, v, wo1_ref[...], bo1_ref[...], nhead, need_weights)
    x = xn + a1

    # --- block 2: norm2 + cross-attention + residual (onto norm2(tgt)) ---
    xn = _layernorm(x, g2_ref[...], be2_ref[...])
    q = jnp.dot(xn.astype(jnp.bfloat16), wq2_ref[...],
                preferred_element_type=jnp.float32) + bq2_ref[...]        # (T, D), pre-scaled
    kv = jnp.dot(m_ref[0].astype(jnp.bfloat16), wkv2_ref[...],
                 preferred_element_type=jnp.float32) + bkv2_ref[...]      # (S, 2D) fused K/V
    k, v = kv[:, :D], kv[:, D:]
    a2, w_cross = _mha(q, k, v, wo2_ref[...], bo2_ref[...], nhead, need_weights)
    x = xn + a2

    # --- block 3: norm3 + FFN (relu) + residual (onto norm3(tgt)) ---
    xn = _layernorm(x, g3_ref[...], be3_ref[...])
    h = jnp.dot(xn.astype(jnp.bfloat16), wf1_ref[...],
                preferred_element_type=jnp.float32) + bf1_ref[...]        # (T, F)
    h = jnp.maximum(h, 0.0)
    y = jnp.dot(h.astype(jnp.bfloat16), wf2_ref[...],
                preferred_element_type=jnp.float32) + bf2_ref[...]        # (T, D)
    o_ref[0] = (xn + y).astype(o_ref.dtype)

    if need_weights:
        w_refs[0][0] = w_self.astype(w_refs[0].dtype)
        w_refs[1][0] = w_cross.astype(w_refs[1].dtype)


# ---------------------------------------------------------------------------
# Wrapper (matches TransformerDecoderLayer.forward; dropout = identity / eval)
# ---------------------------------------------------------------------------
def decoder_layer_forward(params, tgt, memory, *, nhead, need_weights=True):
    # tgt: (T, B, D), memory: (S, B, D)  -- PyTorch (seq, batch, feat) layout
    T, B, D = tgt.shape
    S = memory.shape[0]
    hd = D // nhead
    scale = 1.0 / math.sqrt(hd)

    x = jnp.transpose(tgt, (1, 0, 2))        # batch-first for the kernel
    mem = jnp.transpose(memory, (1, 0, 2))

    sa, ca = params["self_attn"], params["cross_attn"]

    # Self-attention: fused QKV (D, 3D), 1/sqrt(hd) folded into the Q columns.
    qscale = jnp.concatenate([jnp.full((D,), scale, jnp.float32),
                              jnp.ones((2 * D,), jnp.float32)])
    wqkv = (sa["in_proj_weight"].T * qscale[None, :]).astype(jnp.bfloat16)   # (D, 3D)
    bqkv = (sa["in_proj_bias"] * qscale).reshape(1, 3 * D).astype(jnp.float32)
    wo1 = sa["out_proj_weight"].T.astype(jnp.bfloat16)                       # (D, D)
    bo1 = sa["out_proj_bias"].reshape(1, D).astype(jnp.float32)

    # Cross-attention: Q separate (pre-scaled), fused K/V (D, 2D).
    wq2 = (ca["in_proj_weight"][:D].T * scale).astype(jnp.bfloat16)          # (D, D)
    bq2 = (ca["in_proj_bias"][:D] * scale).reshape(1, D).astype(jnp.float32)
    wkv2 = ca["in_proj_weight"][D:].T.astype(jnp.bfloat16)                   # (D, 2D)
    bkv2 = ca["in_proj_bias"][D:].reshape(1, 2 * D).astype(jnp.float32)
    wo2 = ca["out_proj_weight"].T.astype(jnp.bfloat16)                       # (D, D)
    bo2 = ca["out_proj_bias"].reshape(1, D).astype(jnp.float32)

    # FFN
    w1, b1 = params["linear1"]
    w2, b2 = params["linear2"]
    F = w1.shape[0]
    wf1 = w1.T.astype(jnp.bfloat16)                                          # (D, F)
    bf1 = b1.reshape(1, F).astype(jnp.float32)
    wf2 = w2.T.astype(jnp.bfloat16)                                          # (F, D)
    bf2 = b2.reshape(1, D).astype(jnp.float32)

    g1 = params["norm1"]["gamma"].reshape(1, D)
    be1 = params["norm1"]["beta"].reshape(1, D)
    g2 = params["norm2"]["gamma"].reshape(1, D)
    be2 = params["norm2"]["beta"].reshape(1, D)
    g3 = params["norm3"]["gamma"].reshape(1, D)
    be3 = params["norm3"]["beta"].reshape(1, D)

    def rep(shape):
        return pl.BlockSpec(shape, lambda b, _n=len(shape): (0,) * _n)

    in_specs = [
        pl.BlockSpec((1, T, D), lambda b: (b, 0, 0)),    # x
        pl.BlockSpec((1, S, D), lambda b: (b, 0, 0)),    # memory
        rep((1, D)), rep((1, D)),                        # norm1 gamma/beta
        rep((D, 3 * D)), rep((1, 3 * D)),                # wqkv, bqkv
        rep((D, D)), rep((1, D)),                        # wo1, bo1
        rep((1, D)), rep((1, D)),                        # norm2 gamma/beta
        rep((D, D)), rep((1, D)),                        # wq2, bq2
        rep((D, 2 * D)), rep((1, 2 * D)),                # wkv2, bkv2
        rep((D, D)), rep((1, D)),                        # wo2, bo2
        rep((1, D)), rep((1, D)),                        # norm3 gamma/beta
        rep((D, F)), rep((1, F)),                        # wf1, bf1
        rep((F, D)), rep((1, D)),                        # wf2, bf2
    ]

    if need_weights:
        out_shape = (jax.ShapeDtypeStruct((B, T, D), tgt.dtype),
                     jax.ShapeDtypeStruct((B, T, T), jnp.float32),
                     jax.ShapeDtypeStruct((B, T, S), jnp.float32))
        out_specs = (pl.BlockSpec((1, T, D), lambda b: (b, 0, 0)),
                     pl.BlockSpec((1, T, T), lambda b: (b, 0, 0)),
                     pl.BlockSpec((1, T, S), lambda b: (b, 0, 0)))
    else:
        out_shape = jax.ShapeDtypeStruct((B, T, D), tgt.dtype)
        out_specs = pl.BlockSpec((1, T, D), lambda b: (b, 0, 0))

    outs = pl.pallas_call(
        functools.partial(decoder_layer_kernel, nhead=nhead, need_weights=need_weights),
        grid=(B,),
        out_shape=out_shape,
        in_specs=in_specs,
        out_specs=out_specs,
        compiler_params=pltpu.CompilerParams(
            dimension_semantics=("parallel",),
            vmem_limit_bytes=64 * 1024 * 1024),
    )(x, mem,
      g1, be1, wqkv, bqkv, wo1, bo1,
      g2, be2, wq2, bq2, wkv2, bkv2, wo2, bo2,
      g3, be3, wf1, bf1, wf2, bf2)

    if need_weights:
        y, w_self, w_cross = outs
        return jnp.transpose(y, (1, 0, 2)), w_self, w_cross
    return jnp.transpose(outs, (1, 0, 2))


# ---------------------------------------------------------------------------
# Pure-JAX reference (mirrors the PyTorch module's forward exactly)
# ---------------------------------------------------------------------------
def reference_forward(params, tgt, memory, *, nhead):
    def ln(x, p):
        mu = jnp.mean(x, -1, keepdims=True)
        var = jnp.mean((x - mu) ** 2, -1, keepdims=True)
        return (x - mu) / jnp.sqrt(var + _LN_EPS) * p["gamma"] + p["beta"]

    def mha(q_in, k_in, v_in, p):
        T, B, D = q_in.shape
        S = k_in.shape[0]
        hd = D // nhead
        w_in, b_in = p["in_proj_weight"], p["in_proj_bias"]
        q = q_in @ w_in[:D].T + b_in[:D]
        k = k_in @ w_in[D:2 * D].T + b_in[D:2 * D]
        v = v_in @ w_in[2 * D:].T + b_in[2 * D:]

        def split(t, L):
            return t.reshape(L, B, nhead, hd).transpose(1, 2, 0, 3)   # (B,H,L,hd)

        qh, kh, vh = split(q, T), split(k, S), split(v, S)
        scores = jnp.einsum("bhqd,bhkd->bhqk", qh, kh) / math.sqrt(hd)
        p_attn = jax.nn.softmax(scores, axis=-1)
        ctx = jnp.einsum("bhqk,bhkd->bhqd", p_attn, vh)
        ctx = ctx.transpose(2, 0, 1, 3).reshape(T, B, D)
        out = ctx @ p["out_proj_weight"].T + p["out_proj_bias"]
        return out, jnp.mean(p_attn, axis=1)                          # (B,T,S)

    x = ln(tgt, params["norm1"])
    a1, w1 = mha(x, x, x, params["self_attn"])
    x = x + a1
    x = ln(x, params["norm2"])
    a2, w2 = mha(x, memory, memory, params["cross_attn"])
    x = x + a2
    x = ln(x, params["norm3"])
    lw1, lb1 = params["linear1"]
    lw2, lb2 = params["linear2"]
    y = jnp.maximum(x @ lw1.T + lb1, 0.0) @ lw2.T + lb2
    return x + y, w1, w2


# ---------------------------------------------------------------------------
# Deterministic parameter init (shapes from the module's __init__)
# ---------------------------------------------------------------------------
def init_params(key, d_model, dim_ff):
    ks = jax.random.split(key, 4)

    def lin(k, out_d, in_d, s=0.05):
        kw, kb = jax.random.split(k)
        return (s * jax.random.normal(kw, (out_d, in_d), jnp.float32),
                s * jax.random.normal(kb, (out_d,), jnp.float32))

    def mha(k):
        k1, k2 = jax.random.split(k)
        in_w, in_b = lin(k1, 3 * d_model, d_model)
        out_w, out_b = lin(k2, d_model, d_model)
        return {"in_proj_weight": in_w, "in_proj_bias": in_b,
                "out_proj_weight": out_w, "out_proj_bias": out_b}

    def ln():
        return {"gamma": jnp.ones((d_model,), jnp.float32),
                "beta": jnp.zeros((d_model,), jnp.float32)}

    return {
        "self_attn": mha(ks[0]),
        "cross_attn": mha(ks[1]),
        "norm1": ln(), "norm2": ln(), "norm3": ln(),
        "linear1": lin(ks[2], dim_ff, d_model),
        "linear2": lin(ks[3], d_model, dim_ff),
    }


if __name__ == "__main__":
    D_MODEL, NHEAD, DIM_FF = 32, 4, 64
    T, S, B = 8, 16, 2

    root = jax.random.PRNGKey(0)
    kp, kt, km = jax.random.split(root, 3)
    params = init_params(kp, D_MODEL, DIM_FF)
    tgt = jax.random.normal(kt, (T, B, D_MODEL), jnp.float32)
    memory = jax.random.normal(km, (S, B, D_MODEL), jnp.float32)

    fwd = jax.jit(functools.partial(decoder_layer_forward, nhead=NHEAD))
    out, tgt_w, mem_w = fwd(params, tgt, memory)
    jax.block_until_ready((out, tgt_w, mem_w))

    # Shape / sanity / parity checks against the pure-JAX reference (bf16 MXU tolerance).
    ref_out, ref_tw, ref_mw = reference_forward(params, tgt, memory, nhead=NHEAD)
    assert out.shape == (T, B, D_MODEL)
    assert tgt_w.shape == (B, T, T)
    assert mem_w.shape == (B, T, S)
    assert bool(jnp.all(jnp.isfinite(out)))
    assert float(jnp.max(jnp.abs(out - ref_out))) < 1e-1
    assert float(jnp.max(jnp.abs(tgt_w - ref_tw))) < 1e-2
    assert float(jnp.max(jnp.abs(mem_w - ref_mw))) < 1e-2
    print("KERNEL_OK")
</pallas_src>

<mosaic_0001>
module attributes {stable_mosaic.version = 11 : i64} {
  func.func @decoder_layer_kernel(%arg0: i32, %arg1: memref<1x8x32xf32, #tpu.memory_space<vmem>>, %arg2: memref<1x16x32xf32, #tpu.memory_space<vmem>>, %arg3: memref<1x32xf32, #tpu.memory_space<vmem>>, %arg4: memref<1x32xf32, #tpu.memory_space<vmem>>, %arg5: memref<32x96xbf16, #tpu.memory_space<vmem>>, %arg6: memref<1x96xf32, #tpu.memory_space<vmem>>, %arg7: memref<32x32xbf16, #tpu.memory_space<vmem>>, %arg8: memref<1x32xf32, #tpu.memory_space<vmem>>, %arg9: memref<1x32xf32, #tpu.memory_space<vmem>>, %arg10: memref<1x32xf32, #tpu.memory_space<vmem>>, %arg11: memref<32x32xbf16, #tpu.memory_space<vmem>>, %arg12: memref<1x32xf32, #tpu.memory_space<vmem>>, %arg13: memref<32x64xbf16, #tpu.memory_space<vmem>>, %arg14: memref<1x64xf32, #tpu.memory_space<vmem>>, %arg15: memref<32x32xbf16, #tpu.memory_space<vmem>>, %arg16: memref<1x32xf32, #tpu.memory_space<vmem>>, %arg17: memref<1x32xf32, #tpu.memory_space<vmem>>, %arg18: memref<1x32xf32, #tpu.memory_space<vmem>>, %arg19: memref<32x64xbf16, #tpu.memory_space<vmem>>, %arg20: memref<1x64xf32, #tpu.memory_space<vmem>>, %arg21: memref<64x32xbf16, #tpu.memory_space<vmem>>, %arg22: memref<1x32xf32, #tpu.memory_space<vmem>>, %arg23: memref<1x8x32xf32, #tpu.memory_space<vmem>>, %arg24: memref<1x8x8xf32, #tpu.memory_space<vmem>>, %arg25: memref<1x8x16xf32, #tpu.memory_space<vmem>>) attributes {dimension_semantics = [#tpu.dimension_semantics<parallel>], iteration_bounds = array<i64: 2>, scalar_prefetch = 0 : i64, scratch_operands = 0 : i64, tpu.core_type = #tpu.core_type<tc>, window_params = [{transform_indices = @transform_0, window_bounds = array<i64: 1, 8, 32>}, {transform_indices = @transform_1, window_bounds = array<i64: 1, 16, 32>}, {pipeline_mode = #tpu.pipeline_mode<synchronous>, transform_indices = @transform_2, window_bounds = array<i64: 1, 32>}, {pipeline_mode = #tpu.pipeline_mode<synchronous>, transform_indices = @transform_3, window_bounds = array<i64: 1, 32>}, {pipeline_mode = #tpu.pipeline_mode<synchronous>, transform_indices = @transform_4, window_bounds = array<i64: 32, 96>}, {pipeline_mode = #tpu.pipeline_mode<synchronous>, transform_indices = @transform_5, window_bounds = array<i64: 1, 96>}, {pipeline_mode = #tpu.pipeline_mode<synchronous>, transform_indices = @transform_6, window_bounds = array<i64: 32, 32>}, {pipeline_mode = #tpu.pipeline_mode<synchronous>, transform_indices = @transform_7, window_bounds = array<i64: 1, 32>}, {pipeline_mode = #tpu.pipeline_mode<synchronous>, transform_indices = @transform_8, window_bounds = array<i64: 1, 32>}, {pipeline_mode = #tpu.pipeline_mode<synchronous>, transform_indices = @transform_9, window_bounds = array<i64: 1, 32>}, {pipeline_mode = #tpu.pipeline_mode<synchronous>, transform_indices = @transform_10, window_bounds = array<i64: 32, 32>}, {pipeline_mode = #tpu.pipeline_mode<synchronous>, transform_indices = @transform_11, window_bounds = array<i64: 1, 32>}, {pipeline_mode = #tpu.pipeline_mode<synchronous>, transform_indices = @transform_12, window_bounds = array<i64: 32, 64>}, {pipeline_mode = #tpu.pipeline_mode<synchronous>, transform_indices = @transform_13, window_bounds = array<i64: 1, 64>}, {pipeline_mode = #tpu.pipeline_mode<synchronous>, transform_indices = @transform_14, window_bounds = array<i64: 32, 32>}, {pipeline_mode = #tpu.pipeline_mode<synchronous>, transform_indices = @transform_15, window_bounds = array<i64: 1, 32>}, {pipeline_mode = #tpu.pipeline_mode<synchronous>, transform_indices = @transform_16, window_bounds = array<i64: 1, 32>}, {pipeline_mode = #tpu.pipeline_mode<synchronous>, transform_indices = @transform_17, window_bounds = array<i64: 1, 32>}, {pipeline_mode = #tpu.pipeline_mode<synchronous>, transform_indices = @transform_18, window_bounds = array<i64: 32, 64>}, {pipeline_mode = #tpu.pipeline_mode<synchronous>, transform_indices = @transform_19, window_bounds = array<i64: 1, 64>}, {pipeline_mode = #tpu.pipeline_mode<synchronous>, transform_indices = @transform_20, window_bounds = array<i64: 64, 32>}, {pipeline_mode = #tpu.pipeline_mode<synchronous>, transform_indices = @transform_21, window_bounds = array<i64: 1, 32>}, {transform_indices = @transform_22, window_bounds = array<i64: 1, 8, 32>}, {transform_indices = @transform_23, window_bounds = array<i64: 1, 8, 8>}, {transform_indices = @transform_24, window_bounds = array<i64: 1, 8, 16>}]} {
    %c0 = arith.constant 0 : index
    %c0_0 = arith.constant 0 : index
    %c0_1 = arith.constant 0 : index
    %0 = vector.load %arg1[%c0, %c0_0, %c0_1] : memref<1x8x32xf32, #tpu.memory_space<vmem>>, vector<1x8x32xf32>
    %1 = vector.shape_cast %0 : vector<1x8x32xf32> to vector<8x32xf32>
    %c0_2 = arith.constant 0 : index
    %c0_3 = arith.constant 0 : index
    %2 = vector.load %arg3[%c0_2, %c0_3] : memref<1x32xf32, #tpu.memory_space<vmem>>, vector<1x32xf32>
    %c0_4 = arith.constant 0 : index
    %c0_5 = arith.constant 0 : index
    %3 = vector.load %arg4[%c0_4, %c0_5] : memref<1x32xf32, #tpu.memory_space<vmem>>, vector<1x32xf32>
    %cst = arith.constant dense<0.000000e+00> : vector<8xf32>
    %4 = vector.multi_reduction <add>, %1, %cst [1] : vector<8x32xf32> to vector<8xf32>
    %5 = vector.shape_cast %4 : vector<8xf32> to vector<8x1xf32>
    %cst_6 = arith.constant 3.200000e+01 : f32
    %6 = vector.broadcast %cst_6 : f32 to vector<8x1xf32>
    %7 = arith.divf %5, %6 : vector<8x1xf32>
    %8 = vector.broadcast %7 : vector<8x1xf32> to vector<8x32xf32>
    %9 = arith.subf %1, %8 : vector<8x32xf32>
    %10 = arith.mulf %9, %9 : vector<8x32xf32>
    %cst_7 = arith.constant dense<0.000000e+00> : vector<8xf32>
    %11 = vector.multi_reduction <add>, %10, %cst_7 [1] : vector<8x32xf32> to vector<8xf32>
    %12 = vector.shape_cast %11 : vector<8xf32> to vector<8x1xf32>
    %cst_8 = arith.constant 3.200000e+01 : f32
    %13 = vector.broadcast %cst_8 : f32 to vector<8x1xf32>
    %14 = arith.divf %12, %13 : vector<8x1xf32>
    %15 = vector.broadcast %7 : vector<8x1xf32> to vector<8x32xf32>
    %16 = arith.subf %1, %15 : vector<8x32xf32>
    %cst_9 = arith.constant 9.99999974E-6 : f32
    %17 = vector.broadcast %cst_9 : f32 to vector<8x1xf32>
    %18 = arith.addf %14, %17 : vector<8x1xf32>
    %19 = math.rsqrt %18 : vector<8x1xf32>
    %20 = vector.broadcast %19 : vector<8x1xf32> to vector<8x32xf32>
    %21 = arith.mulf %16, %20 : vector<8x32xf32>
    %22 = vector.broadcast %2 : vector<1x32xf32> to vector<8x32xf32>
    %23 = arith.mulf %21, %22 : vector<8x32xf32>
    %24 = vector.broadcast %3 : vector<1x32xf32> to vector<8x32xf32>
    %25 = arith.addf %23, %24 : vector<8x32xf32>
    %26 = arith.truncf %25 : vector<8x32xf32> to vector<8x32xbf16>
    %c0_10 = arith.constant 0 : index
    %c0_11 = arith.constant 0 : index
    %27 = vector.load %arg5[%c0_10, %c0_11] : memref<32x96xbf16, #tpu.memory_space<vmem>>, vector<32x96xbf16>
    %cst_12 = arith.constant dense<0.000000e+00> : vector<8x96xf32>
    %28 = tpu.matmul %26, %27, %cst_12 {dimension_numbers = #tpu.dot_dimension_numbers<[1], [0], [0], [1], [0, 0, 1, 1], [], []>} : vector<8x32xbf16>, vector<32x96xbf16>, vector<8x96xf32> -> vector<8x96xf32>
    %c0_13 = arith.constant 0 : index
    %c0_14 = arith.constant 0 : index
    %29 = vector.load %arg6[%c0_13, %c0_14] : memref<1x96xf32, #tpu.memory_space<vmem>>, vector<1x96xf32>
    %30 = vector.broadcast %29 : vector<1x96xf32> to vector<8x96xf32>
    %31 = arith.addf %28, %30 : vector<8x96xf32>
    %32 = vector.extract_strided_slice %31 {offsets = [0, 0], sizes = [8, 32], strides = [1, 1]} : vector<8x96xf32> to vector<8x32xf32>
    %33 = vector.extract_strided_slice %31 {offsets = [0, 32], sizes = [8, 32], strides = [1, 1]} : vector<8x96xf32> to vector<8x32xf32>
    %34 = vector.extract_strided_slice %31 {offsets = [0, 64], sizes = [8, 32], strides = [1, 1]} : vector<8x96xf32> to vector<8x32xf32>
    %c0_15 = arith.constant 0 : index
    %c0_16 = arith.constant 0 : index
    %35 = vector.load %arg7[%c0_15, %c0_16] : memref<32x32xbf16, #tpu.memory_space<vmem>>, vector<32x32xbf16>
    %c0_17 = arith.constant 0 : index
    %c0_18 = arith.constant 0 : index
    %36 = vector.load %arg8[%c0_17, %c0_18] : memref<1x32xf32, #tpu.memory_space<vmem>>, vector<1x32xf32>
    %37 = arith.truncf %32 : vector<8x32xf32> to vector<8x32xbf16>
    %38 = arith.truncf %33 : vector<8x32xf32> to vector<8x32xbf16>
    %39 = arith.truncf %34 : vector<8x32xf32> to vector<8x32xbf16>
    %cst_19 = arith.constant 0.000000e+00 : f32
    %40 = vector.broadcast %cst_19 : f32 to vector<8x32xf32>
    %cst_20 = arith.constant 0.000000e+00 : f32
    %41 = vector.broadcast %cst_20 : f32 to vector<8x8xf32>
    %42 = vector.extract_strided_slice %37 {offsets = [0, 0], sizes = [8, 8], strides = [1, 1]} : vector<8x32xbf16> to vector<8x8xbf16>
    %43 = vector.extract_strided_slice %38 {offsets = [0, 0], sizes = [8, 8], strides = [1, 1]} : vector<8x32xbf16> to vector<8x8xbf16>
    %cst_21 = arith.constant dense<0.000000e+00> : vector<8x8xf32>
    %44 = tpu.matmul %42, %43, %cst_21 {dimension_numbers = #tpu.dot_dimension_numbers<[1], [1], [0], [0], [0, 0, 1, 0], [], []>} : vector<8x8xbf16>, vector<8x8xbf16>, vector<8x8xf32> -> vector<8x8xf32>
    %cst_22 = arith.constant dense<0xFF800000> : vector<8xf32>
    %45 = vector.multi_reduction <maximumf>, %44, %cst_22 [1] : vector<8x8xf32> to vector<8xf32>
    %46 = vector.shape_cast %45 : vector<8xf32> to vector<8x1xf32>
    %47 = vector.broadcast %46 : vector<8x1xf32> to vector<8x8xf32>
    %48 = arith.subf %44, %47 : vector<8x8xf32>
    %49 = math.exp %48 : vector<8x8xf32>
    %cst_23 = arith.constant dense<0.000000e+00> : vector<8xf32>
    %50 = vector.multi_reduction <add>, %49, %cst_23 [1] : vector<8x8xf32> to vector<8xf32>
    %51 = vector.shape_cast %50 : vector<8xf32> to vector<8x1xf32>
    %52 = vector.broadcast %51 : vector<8x1xf32> to vector<8x8xf32>
    %53 = arith.divf %49, %52 : vector<8x8xf32>
    %54 = arith.truncf %53 : vector<8x8xf32> to vector<8x8xbf16>
    %55 = vector.extract_strided_slice %39 {offsets = [0, 0], sizes = [8, 8], strides = [1, 1]} : vector<8x32xbf16> to vector<8x8xbf16>
    %cst_24 = arith.constant dense<0.000000e+00> : vector<8x8xf32>
    %56 = tpu.matmul %54, %55, %cst_24 {dimension_numbers = #tpu.dot_dimension_numbers<[1], [0], [0], [1], [0, 0, 1, 1], [], []>} : vector<8x8xbf16>, vector<8x8xbf16>, vector<8x8xf32> -> vector<8x8xf32>
    %57 = arith.truncf %56 : vector<8x8xf32> to vector<8x8xbf16>
    %58 = vector.extract_strided_slice %35 {offsets = [0, 0], sizes = [8, 32], strides = [1, 1]} : vector<32x32xbf16> to vector<8x32xbf16>
    %cst_25 = arith.constant dense<0.000000e+00> : vector<8x32xf32>
    %59 = tpu.matmul %57, %58, %cst_25 {dimension_numbers = #tpu.dot_dimension_numbers<[1], [0], [0], [1], [0, 0, 1, 1], [], []>} : vector<8x8xbf16>, vector<8x32xbf16>, vector<8x32xf32> -> vector<8x32xf32>
    %60 = arith.addf %40, %59 : vector<8x32xf32>
    %61 = arith.addf %41, %53 : vector<8x8xf32>
    %62 = vector.extract_strided_slice %37 {offsets = [0, 8], sizes = [8, 8], strides = [1, 1]} : vector<8x32xbf16> to vector<8x8xbf16>
    %63 = vector.extract_strided_slice %38 {offsets = [0, 8], sizes = [8, 8], strides = [1, 1]} : vector<8x32xbf16> to vector<8x8xbf16>
    %cst_26 = arith.constant dense<0.000000e+00> : vector<8x8xf32>
    %64 = tpu.matmul %62, %63, %cst_26 {dimension_numbers = #tpu.dot_dimension_numbers<[1], [1], [0], [0], [0, 0, 1, 0], [], []>} : vector<8x8xbf16>, vector<8x8xbf16>, vector<8x8xf32> -> vector<8x8xf32>
    %cst_27 = arith.constant dense<0xFF800000> : vector<8xf32>
    %65 = vector.multi_reduction <maximumf>, %64, %cst_27 [1] : vector<8x8xf32> to vector<8xf32>
    %66 = vector.shape_cast %65 : vector<8xf32> to vector<8x1xf32>
    %67 = vector.broadcast %66 : vector<8x1xf32> to vector<8x8xf32>
    %68 = arith.subf %64, %67 : vector<8x8xf32>
    %69 = math.exp %68 : vector<8x8xf32>
    %cst_28 = arith.constant dense<0.000000e+00> : vector<8xf32>
    %70 = vector.multi_reduction <add>, %69, %cst_28 [1] : vector<8x8xf32> to vector<8xf32>
    %71 = vector.shape_cast %70 : vector<8xf32> to vector<8x1xf32>
    %72 = vector.broadcast %71 : vector<8x1xf32> to vector<8x8xf32>
    %73 = arith.divf %69, %72 : vector<8x8xf32>
    %74 = arith.truncf %73 : vector<8x8xf32> to vector<8x8xbf16>
    %75 = vector.extract_strided_slice %39 {offsets = [0, 8], sizes = [8, 8], strides = [1, 1]} : vector<8x32xbf16> to vector<8x8xbf16>
    %cst_29 = arith.constant dense<0.000000e+00> : vector<8x8xf32>
    %76 = tpu.matmul %74, %75, %cst_29 {dimension_numbers = #tpu.dot_dimension_numbers<[1], [0], [0], [1], [0, 0, 1, 1], [], []>} : vector<8x8xbf16>, vector<8x8xbf16>, vector<8x8xf32> -> vector<8x8xf32>
    %77 = arith.truncf %76 : vector<8x8xf32> to vector<8x8xbf16>
    %78 = vector.extract_strided_slice %35 {offsets = [8, 0], sizes = [8, 32], strides = [1, 1]} : vector<32x32xbf16> to vector<8x32xbf16>
    %cst_30 = arith.constant dense<0.000000e+00> : vector<8x32xf32>
    %79 = tpu.matmul %77, %78, %cst_30 {dimension_numbers = #tpu.dot_dimension_numbers<[1], [0], [0], [1], [0, 0, 1, 1], [], []>} : vector<8x8xbf16>, vector<8x32xbf16>, vector<8x32xf32> -> vector<8x32xf32>
    %80 = arith.addf %60, %79 : vector<8x32xf32>
    %81 = arith.addf %61, %73 : vector<8x8xf32>
    %82 = vector.extract_strided_slice %37 {offsets = [0, 16], sizes = [8, 8], strides = [1, 1]} : vector<8x32xbf16> to vector<8x8xbf16>
    %83 = vector.extract_strided_slice %38 {offsets = [0, 16], sizes = [8, 8], strides = [1, 1]} : vector<8x32xbf16> to vector<8x8xbf16>
    %cst_31 = arith.constant dense<0.000000e+00> : vector<8x8xf32>
    %84 = tpu.matmul %82, %83, %cst_31 {dimension_numbers = #tpu.dot_dimension_numbers<[1], [1], [0], [0], [0, 0, 1, 0], [], []>} : vector<8x8xbf16>, vector<8x8xbf16>, vector<8x8xf32> -> vector<8x8xf32>
    %cst_32 = arith.constant dense<0xFF800000> : vector<8xf32>
    %85 = vector.multi_reduction <maximumf>, %84, %cst_32 [1] : vector<8x8xf32> to vector<8xf32>
    %86 = vector.shape_cast %85 : vector<8xf32> to vector<8x1xf32>
    %87 = vector.broadcast %86 : vector<8x1xf32> to vector<8x8xf32>
    %88 = arith.subf %84, %87 : vector<8x8xf32>
    %89 = math.exp %88 : vector<8x8xf32>
    %cst_33 = arith.constant dense<0.000000e+00> : vector<8xf32>
    %90 = vector.multi_reduction <add>, %89, %cst_33 [1] : vector<8x8xf32> to vector<8xf32>
    %91 = vector.shape_cast %90 : vector<8xf32> to vector<8x1xf32>
    %92 = vector.broadcast %91 : vector<8x1xf32> to vector<8x8xf32>
    %93 = arith.divf %89, %92 : vector<8x8xf32>
    %94 = arith.truncf %93 : vector<8x8xf32> to vector<8x8xbf16>
    %95 = vector.extract_strided_slice %39 {offsets = [0, 16], sizes = [8, 8], strides = [1, 1]} : vector<8x32xbf16> to vector<8x8xbf16>
    %cst_34 = arith.constant dense<0.000000e+00> : vector<8x8xf32>
    %96 = tpu.matmul %94, %95, %cst_34 {dimension_numbers = #tpu.dot_dimension_numbers<[1], [0], [0], [1], [0, 0, 1, 1], [], []>} : vector<8x8xbf16>, vector<8x8xbf16>, vector<8x8xf32> -> vector<8x8xf32>
    %97 = arith.truncf %96 : vector<8x8xf32> to vector<8x8xbf16>
    %98 = vector.extract_strided_slice %35 {offsets = [16, 0], sizes = [8, 32], strides = [1, 1]} : vector<32x32xbf16> to vector<8x32xbf16>
    %cst_35 = arith.constant dense<0.000000e+00> : vector<8x32xf32>
    %99 = tpu.matmul %97, %98, %cst_35 {dimension_numbers = #tpu.dot_dimension_numbers<[1], [0], [0], [1], [0, 0, 1, 1], [], []>} : vector<8x8xbf16>, vector<8x32xbf16>, vector<8x32xf32> -> vector<8x32xf32>
    %100 = arith.addf %80, %99 : vector<8x32xf32>
    %101 = arith.addf %81, %93 : vector<8x8xf32>
    %102 = vector.extract_strided_slice %37 {offsets = [0, 24], sizes = [8, 8], strides = [1, 1]} : vector<8x32xbf16> to vector<8x8xbf16>
    %103 = vector.extract_strided_slice %38 {offsets = [0, 24], sizes = [8, 8], strides = [1, 1]} : vector<8x32xbf16> to vector<8x8xbf16>
    %cst_36 = arith.constant dense<0.000000e+00> : vector<8x8xf32>
    %104 = tpu.matmul %102, %103, %cst_36 {dimension_numbers = #tpu.dot_dimension_numbers<[1], [1], [0], [0], [0, 0, 1, 0], [], []>} : vector<8x8xbf16>, vector<8x8xbf16>, vector<8x8xf32> -> vector<8x8xf32>
    %cst_37 = arith.constant dense<0xFF800000> : vector<8xf32>
    %105 = vector.multi_reduction <maximumf>, %104, %cst_37 [1] : vector<8x8xf32> to vector<8xf32>
    %106 = vector.shape_cast %105 : vector<8xf32> to vector<8x1xf32>
    %107 = vector.broadcast %106 : vector<8x1xf32> to vector<8x8xf32>
    %108 = arith.subf %104, %107 : vector<8x8xf32>
    %109 = math.exp %108 : vector<8x8xf32>
    %cst_38 = arith.constant dense<0.000000e+00> : vector<8xf32>
    %110 = vector.multi_reduction <add>, %109, %cst_38 [1] : vector<8x8xf32> to vector<8xf32>
    %111 = vector.shape_cast %110 : vector<8xf32> to vector<8x1xf32>
    %112 = vector.broadcast %111 : vector<8x1xf32> to vector<8x8xf32>
    %113 = arith.divf %109, %112 : vector<8x8xf32>
    %114 = arith.truncf %113 : vector<8x8xf32> to vector<8x8xbf16>
    %115 = vector.extract_strided_slice %39 {offsets = [0, 24], sizes = [8, 8], strides = [1, 1]} : vector<8x32xbf16> to vector<8x8xbf16>
    %cst_39 = arith.constant dense<0.000000e+00> : vector<8x8xf32>
    %116 = tpu.matmul %114, %115, %cst_39 {dimension_numbers = #tpu.dot_dimension_numbers<[1], [0], [0], [1], [0, 0, 1, 1], [], []>} : vector<8x8xbf16>, vector<8x8xbf16>, vector<8x8xf32> -> vector<8x8xf32>
    %117 = arith.truncf %116 : vector<8x8xf32> to vector<8x8xbf16>
    %118 = vector.extract_strided_slice %35 {offsets = [24, 0], sizes = [8, 32], strides = [1, 1]} : vector<32x32xbf16> to vector<8x32xbf16>
    %cst_40 = arith.constant dense<0.000000e+00> : vector<8x32xf32>
    %119 = tpu.matmul %117, %118, %cst_40 {dimension_numbers = #tpu.dot_dimension_numbers<[1], [0], [0], [1], [0, 0, 1, 1], [], []>} : vector<8x8xbf16>, vector<8x32xbf16>, vector<8x32xf32> -> vector<8x32xf32>
    %120 = arith.addf %100, %119 : vector<8x32xf32>
    %121 = arith.addf %101, %113 : vector<8x8xf32>
    %122 = vector.broadcast %36 : vector<1x32xf32> to vector<8x32xf32>
    %123 = arith.addf %120, %122 : vector<8x32xf32>
    %cst_41 = arith.constant 2.500000e-01 : f32
    %124 = vector.broadcast %cst_41 : f32 to vector<8x8xf32>
    %125 = arith.mulf %121, %124 : vector<8x8xf32>
    %126 = arith.addf %25, %123 : vector<8x32xf32>
    %c0_42 = arith.constant 0 : index
    %c0_43 = arith.constant 0 : index
    %127 = vector.load %arg9[%c0_42, %c0_43] : memref<1x32xf32, #tpu.memory_space<vmem>>, vector<1x32xf32>
    %c0_44 = arith.constant 0 : index
    %c0_45 = arith.constant 0 : index
    %128 = vector.load %arg10[%c0_44, %c0_45] : memref<1x32xf32, #tpu.memory_space<vmem>>, vector<1x32xf32>
    %cst_46 = arith.constant dense<0.000000e+00> : vector<8xf32>
    %129 = vector.multi_reduction <add>, %126, %cst_46 [1] : vector<8x32xf32> to vector<8xf32>
    %130 = vector.shape_cast %129 : vector<8xf32> to vector<8x1xf32>
    %cst_47 = arith.constant 3.200000e+01 : f32
    %131 = vector.broadcast %cst_47 : f32 to vector<8x1xf32>
    %132 = arith.divf %130, %131 : vector<8x1xf32>
    %133 = vector.broadcast %132 : vector<8x1xf32> to vector<8x32xf32>
    %134 = arith.subf %126, %133 : vector<8x32xf32>
    %135 = arith.mulf %134, %134 : vector<8x32xf32>
    %cst_48 = arith.constant dense<0.000000e+00> : vector<8xf32>
    %136 = vector.multi_reduction <add>, %135, %cst_48 [1] : vector<8x32xf32> to vector<8xf32>
    %137 = vector.shape_cast %136 : vector<8xf32> to vector<8x1xf32>
    %cst_49 = arith.constant 3.200000e+01 : f32
    %138 = vector.broadcast %cst_49 : f32 to vector<8x1xf32>
    %139 = arith.divf %137, %138 : vector<8x1xf32>
    %140 = vector.broadcast %132 : vector<8x1xf32> to vector<8x32xf32>
    %141 = arith.subf %126, %140 : vector<8x32xf32>
    %cst_50 = arith.constant 9.99999974E-6 : f32
    %142 = vector.broadcast %cst_50 : f32 to vector<8x1xf32>
    %143 = arith.addf %139, %142 : vector<8x1xf32>
    %144 = math.rsqrt %143 : vector<8x1xf32>
    %145 = vector.broadcast %144 : vector<8x1xf32> to vector<8x32xf32>
    %146 = arith.mulf %141, %145 : vector<8x32xf32>
    %147 = vector.broadcast %127 : vector<1x32xf32> to vector<8x32xf32>
    %148 = arith.mulf %146, %147 : vector<8x32xf32>
    %149 = vector.broadcast %128 : vector<1x32xf32> to vector<8x32xf32>
    %150 = arith.addf %148, %149 : vector<8x32xf32>
    %151 = arith.truncf %150 : vector<8x32xf32> to vector<8x32xbf16>
    %c0_51 = arith.constant 0 : index
    %c0_52 = arith.constant 0 : index
    %152 = vector.load %arg11[%c0_51, %c0_52] : memref<32x32xbf16, #tpu.memory_space<vmem>>, vector<32x32xbf16>
    %cst_53 = arith.constant dense<0.000000e+00> : vector<8x32xf32>
    %153 = tpu.matmul %151, %152, %cst_53 {dimension_numbers = #tpu.dot_dimension_numbers<[1], [0], [0], [1], [0, 0, 1, 1], [], []>} : vector<8x32xbf16>, vector<32x32xbf16>, vector<8x32xf32> -> vector<8x32xf32>
    %c0_54 = arith.constant 0 : index
    %c0_55 = arith.constant 0 : index
    %154 = vector.load %arg12[%c0_54, %c0_55] : memref<1x32xf32, #tpu.memory_space<vmem>>, vector<1x32xf32>
    %155 = vector.broadcast %154 : vector<1x32xf32> to vector<8x32xf32>
    %156 = arith.addf %153, %155 : vector<8x32xf32>
    %c0_56 = arith.constant 0 : index
    %c0_57 = arith.constant 0 : index
    %c0_58 = arith.constant 0 : index
    %157 = vector.load %arg2[%c0_56, %c0_57, %c0_58] : memref<1x16x32xf32, #tpu.memory_space<vmem>>, vector<1x16x32xf32>
    %158 = vector.shape_cast %157 : vector<1x16x32xf32> to vector<16x32xf32>
    %159 = arith.truncf %158 : vector<16x32xf32> to vector<16x32xbf16>
    %c0_59 = arith.constant 0 : index
    %c0_60 = arith.constant 0 : index
    %160 = vector.load %arg13[%c0_59, %c0_60] : memref<32x64xbf16, #tpu.memory_space<vmem>>, vector<32x64xbf16>
    %cst_61 = arith.constant dense<0.000000e+00> : vector<16x64xf32>
    %161 = tpu.matmul %159, %160, %cst_61 {dimension_numbers = #tpu.dot_dimension_numbers<[1], [0], [0], [1], [0, 0, 1, 1], [], []>} : vector<16x32xbf16>, vector<32x64xbf16>, vector<16x64xf32> -> vector<16x64xf32>
    %c0_62 = arith.constant 0 : index
    %c0_63 = arith.constant 0 : index
    %162 = vector.load %arg14[%c0_62, %c0_63] : memref<1x64xf32, #tpu.memory_space<vmem>>, vector<1x64xf32>
    %163 = vector.broadcast %162 : vector<1x64xf32> to vector<16x64xf32>
    %164 = arith.addf %161, %163 : vector<16x64xf32>
    %165 = vector.extract_strided_slice %164 {offsets = [0, 0], sizes = [16, 32], strides = [1, 1]} : vector<16x64xf32> to vector<16x32xf32>
    %166 = vector.extract_strided_slice %164 {offsets = [0, 32], sizes = [16, 32], strides = [1, 1]} : vector<16x64xf32> to vector<16x32xf32>
    %c0_64 = arith.constant 0 : index
    %c0_65 = arith.constant 0 : index
    %167 = vector.load %arg15[%c0_64, %c0_65] : memref<32x32xbf16, #tpu.memory_space<vmem>>, vector<32x32xbf16>
    %c0_66 = arith.constant 0 : index
    %c0_67 = arith.constant 0 : index
    %168 = vector.load %arg16[%c0_66, %c0_67] : memref<1x32xf32, #tpu.memory_space<vmem>>, vector<1x32xf32>
    %169 = arith.truncf %156 : vector<8x32xf32> to vector<8x32xbf16>
    %170 = arith.truncf %165 : vector<16x32xf32> to vector<16x32xbf16>
    %171 = arith.truncf %166 : vector<16x32xf32> to vector<16x32xbf16>
    %cst_68 = arith.constant 0.000000e+00 : f32
    %172 = vector.broadcast %cst_68 : f32 to vector<8x32xf32>
    %cst_69 = arith.constant 0.000000e+00 : f32
    %173 = vector.broadcast %cst_69 : f32 to vector<8x16xf32>
    %174 = vector.extract_strided_slice %169 {offsets = [0, 0], sizes = [8, 8], strides = [1, 1]} : vector<8x32xbf16> to vector<8x8xbf16>
    %175 = vector.extract_strided_slice %170 {offsets = [0, 0], sizes = [16, 8], strides = [1, 1]} : vector<16x32xbf16> to vector<16x8xbf16>
    %cst_70 = arith.constant dense<0.000000e+00> : vector<8x16xf32>
    %176 = tpu.matmul %174, %175, %cst_70 {dimension_numbers = #tpu.dot_dimension_numbers<[1], [1], [0], [0], [0, 0, 1, 0], [], []>} : vector<8x8xbf16>, vector<16x8xbf16>, vector<8x16xf32> -> vector<8x16xf32>
    %cst_71 = arith.constant dense<0xFF800000> : vector<8xf32>
    %177 = vector.multi_reduction <maximumf>, %176, %cst_71 [1] : vector<8x16xf32> to vector<8xf32>
    %178 = vector.shape_cast %177 : vector<8xf32> to vector<8x1xf32>
    %179 = vector.broadcast %178 : vector<8x1xf32> to vector<8x16xf32>
    %180 = arith.subf %176, %179 : vector<8x16xf32>
    %181 = math.exp %180 : vector<8x16xf32>
    %cst_72 = arith.constant dense<0.000000e+00> : vector<8xf32>
    %182 = vector.multi_reduction <add>, %181, %cst_72 [1] : vector<8x16xf32> to vector<8xf32>
    %183 = vector.shape_cast %182 : vector<8xf32> to vector<8x1xf32>
    %184 = vector.broadcast %183 : vector<8x1xf32> to vector<8x16xf32>
    %185 = arith.divf %181, %184 : vector<8x16xf32>
    %186 = arith.truncf %185 : vector<8x16xf32> to vector<8x16xbf16>
    %187 = vector.extract_strided_slice %171 {offsets = [0, 0], sizes = [16, 8], strides = [1, 1]} : vector<16x32xbf16> to vector<16x8xbf16>
    %cst_73 = arith.constant dense<0.000000e+00> : vector<8x8xf32>
    %188 = tpu.matmul %186, %187, %cst_73 {dimension_numbers = #tpu.dot_dimension_numbers<[1], [0], [0], [1], [0, 0, 1, 1], [], []>} : vector<8x16xbf16>, vector<16x8xbf16>, vector<8x8xf32> -> vector<8x8xf32>
    %189 = arith.truncf %188 : vector<8x8xf32> to vector<8x8xbf16>
    %190 = vector.extract_strided_slice %167 {offsets = [0, 0], sizes = [8, 32], strides = [1, 1]} : vector<32x32xbf16> to vector<8x32xbf16>
    %cst_74 = arith.constant dense<0.000000e+00> : vector<8x32xf32>
    %191 = tpu.matmul %189, %190, %cst_74 {dimension_numbers = #tpu.dot_dimension_numbers<[1], [0], [0], [1], [0, 0, 1, 1], [], []>} : vector<8x8xbf16>, vector<8x32xbf16>, vector<8x32xf32> -> vector<8x32xf32>
    %192 = arith.addf %172, %191 : vector<8x32xf32>
    %193 = arith.addf %173, %185 : vector<8x16xf32>
    %194 = vector.extract_strided_slice %169 {offsets = [0, 8], sizes = [8, 8], strides = [1, 1]} : vector<8x32xbf16> to vector<8x8xbf16>
    %195 = vector.extract_strided_slice %170 {offsets = [0, 8], sizes = [16, 8], strides = [1, 1]} : vector<16x32xbf16> to vector<16x8xbf16>
    %cst_75 = arith.constant dense<0.000000e+00> : vector<8x16xf32>
    %196 = tpu.matmul %194, %195, %cst_75 {dimension_numbers = #tpu.dot_dimension_numbers<[1], [1], [0], [0], [0, 0, 1, 0], [], []>} : vector<8x8xbf16>, vector<16x8xbf16>, vector<8x16xf32> -> vector<8x16xf32>
    %cst_76 = arith.constant dense<0xFF800000> : vector<8xf32>
    %197 = vector.multi_reduction <maximumf>, %196, %cst_76 [1] : vector<8x16xf32> to vector<8xf32>
    %198 = vector.shape_cast %197 : vector<8xf32> to vector<8x1xf32>
    %199 = vector.broadcast %198 : vector<8x1xf32> to vector<8x16xf32>
    %200 = arith.subf %196, %199 : vector<8x16xf32>
    %201 = math.exp %200 : vector<8x16xf32>
    %cst_77 = arith.constant dense<0.000000e+00> : vector<8xf32>
    %202 = vector.multi_reduction <add>, %201, %cst_77 [1] : vector<8x16xf32> to vector<8xf32>
    %203 = vector.shape_cast %202 : vector<8xf32> to vector<8x1xf32>
    %204 = vector.broadcast %203 : vector<8x1xf32> to vector<8x16xf32>
    %205 = arith.divf %201, %204 : vector<8x16xf32>
    %206 = arith.truncf %205 : vector<8x16xf32> to vector<8x16xbf16>
    %207 = vector.extract_strided_slice %171 {offsets = [0, 8], sizes = [16, 8], strides = [1, 1]} : vector<16x32xbf16> to vector<16x8xbf16>
    %cst_78 = arith.constant dense<0.000000e+00> : vector<8x8xf32>
    %208 = tpu.matmul %206, %207, %cst_78 {dimension_numbers = #tpu.dot_dimension_numbers<[1], [0], [0], [1], [0, 0, 1, 1], [], []>} : vector<8x16xbf16>, vector<16x8xbf16>, vector<8x8xf32> -> vector<8x8xf32>
    %209 = arith.truncf %208 : vector<8x8xf32> to vector<8x8xbf16>
    %210 = vector.extract_strided_slice %167 {offsets = [8, 0], sizes = [8, 32], strides = [1, 1]} : vector<32x32xbf16> to vector<8x32xbf16>
    %cst_79 = arith.constant dense<0.000000e+00> : vector<8x32xf32>
    %211 = tpu.matmul %209, %210, %cst_79 {dimension_numbers = #tpu.dot_dimension_numbers<[1], [0], [0], [1], [0, 0, 1, 1], [], []>} : vector<8x8xbf16>, vector<8x32xbf16>, vector<8x32xf32> -> vector<8x32xf32>
    %212 = arith.addf %192, %211 : vector<8x32xf32>
    %213 = arith.addf %193, %205 : vector<8x16xf32>
    %214 = vector.extract_strided_slice %169 {offsets = [0, 16], sizes = [8, 8], strides = [1, 1]} : vector<8x32xbf16> to vector<8x8xbf16>
    %215 = vector.extract_strided_slice %170 {offsets = [0, 16], sizes = [16, 8], strides = [1, 1]} : vector<16x32xbf16> to vector<16x8xbf16>
    %cst_80 = arith.constant dense<0.000000e+00> : vector<8x16xf32>
    %216 = tpu.matmul %214, %215, %cst_80 {dimension_numbers = #tpu.dot_dimension_numbers<[1], [1], [0], [0], [0, 0, 1, 0], [], []>} : vector<8x8xbf16>, vector<16x8xbf16>, vector<8x16xf32> -> vector<8x16xf32>
    %cst_81 = arith.constant dense<0xFF800000> : vector<8xf32>
    %217 = vector.multi_reduction <maximumf>, %216, %cst_81 [1] : vector<8x16xf32> to vector<8xf32>
    %218 = vector.shape_cast %217 : vector<8xf32> to vector<8x1xf32>
    %219 = vector.broadcast %218 : vector<8x1xf32> to vector<8x16xf32>
    %220 = arith.subf %216, %219 : vector<8x16xf32>
    %221 = math.exp %220 : vector<8x16xf32>
    %cst_82 = arith.constant dense<0.000000e+00> : vector<8xf32>
    %222 = vector.multi_reduction <add>, %221, %cst_82 [1] : vector<8x16xf32> to vector<8xf32>
    %223 = vector.shape_cast %222 : vector<8xf32> to vector<8x1xf32>
    %224 = vector.broadcast %223 : vector<8x1xf32> to vector<8x16xf32>
    %225 = arith.divf %221, %224 : vector<8x16xf32>
    %226 = arith.truncf %225 : vector<8x16xf32> to vector<8x16xbf16>
    %227 = vector.extract_strided_slice %171 {offsets = [0, 16], sizes = [16, 8], strides = [1, 1]} : vector<16x32xbf16> to vector<16x8xbf16>
    %cst_83 = arith.constant dense<0.000000e+00> : vector<8x8xf32>
    %228 = tpu.matmul %226, %227, %cst_83 {dimension_numbers = #tpu.dot_dimension_numbers<[1], [0], [0], [1], [0, 0, 1, 1], [], []>} : vector<8x16xbf16>, vector<16x8xbf16>, vector<8x8xf32> -> vector<8x8xf32>
    %229 = arith.truncf %228 : vector<8x8xf32> to vector<8x8xbf16>
    %230 = vector.extract_strided_slice %167 {offsets = [16, 0], sizes = [8, 32], strides = [1, 1]} : vector<32x32xbf16> to vector<8x32xbf16>
    %cst_84 = arith.constant dense<0.000000e+00> : vector<8x32xf32>
    %231 = tpu.matmul %229, %230, %cst_84 {dimension_numbers = #tpu.dot_dimension_numbers<[1], [0], [0], [1], [0, 0, 1, 1], [], []>} : vector<8x8xbf16>, vector<8x32xbf16>, vector<8x32xf32> -> vector<8x32xf32>
    %232 = arith.addf %212, %231 : vector<8x32xf32>
    %233 = arith.addf %213, %225 : vector<8x16xf32>
    %234 = vector.extract_strided_slice %169 {offsets = [0, 24], sizes = [8, 8], strides = [1, 1]} : vector<8x32xbf16> to vector<8x8xbf16>
    %235 = vector.extract_strided_slice %170 {offsets = [0, 24], sizes = [16, 8], strides = [1, 1]} : vector<16x32xbf16> to vector<16x8xbf16>
    %cst_85 = arith.constant dense<0.000000e+00> : vector<8x16xf32>
    %236 = tpu.matmul %234, %235, %cst_85 {dimension_numbers = #tpu.dot_dimension_numbers<[1], [1], [0], [0], [0, 0, 1, 0], [], []>} : vector<8x8xbf16>, vector<16x8xbf16>, vector<8x16xf32> -> vector<8x16xf32>
    %cst_86 = arith.constant dense<0xFF800000> : vector<8xf32>
    %237 = vector.multi_reduction <maximumf>, %236, %cst_86 [1] : vector<8x16xf32> to vector<8xf32>
    %238 = vector.shape_cast %237 : vector<8xf32> to vector<8x1xf32>
    %239 = vector.broadcast %238 : vector<8x1xf32> to vector<8x16xf32>
    %240 = arith.subf %236, %239 : vector<8x16xf32>
    %241 = math.exp %240 : vector<8x16xf32>
    %cst_87 = arith.constant dense<0.000000e+00> : vector<8xf32>
    %242 = vector.multi_reduction <add>, %241, %cst_87 [1] : vector<8x16xf32> to vector<8xf32>
    %243 = vector.shape_cast %242 : vector<8xf32> to vector<8x1xf32>
    %244 = vector.broadcast %243 : vector<8x1xf32> to vector<8x16xf32>
    %245 = arith.divf %241, %244 : vector<8x16xf32>
    %246 = arith.truncf %245 : vector<8x16xf32> to vector<8x16xbf16>
    %247 = vector.extract_strided_slice %171 {offsets = [0, 24], sizes = [16, 8], strides = [1, 1]} : vector<16x32xbf16> to vector<16x8xbf16>
    %cst_88 = arith.constant dense<0.000000e+00> : vector<8x8xf32>
    %248 = tpu.matmul %246, %247, %cst_88 {dimension_numbers = #tpu.dot_dimension_numbers<[1], [0], [0], [1], [0, 0, 1, 1], [], []>} : vector<8x16xbf16>, vector<16x8xbf16>, vector<8x8xf32> -> vector<8x8xf32>
    %249 = arith.truncf %248 : vector<8x8xf32> to vector<8x8xbf16>
    %250 = vector.extract_strided_slice %167 {offsets = [24, 0], sizes = [8, 32], strides = [1, 1]} : vector<32x32xbf16> to vector<8x32xbf16>
    %cst_89 = arith.constant dense<0.000000e+00> : vector<8x32xf32>
    %251 = tpu.matmul %249, %250, %cst_89 {dimension_numbers = #tpu.dot_dimension_numbers<[1], [0], [0], [1], [0, 0, 1, 1], [], []>} : vector<8x8xbf16>, vector<8x32xbf16>, vector<8x32xf32> -> vector<8x32xf32>
    %252 = arith.addf %232, %251 : vector<8x32xf32>
    %253 = arith.addf %233, %245 : vector<8x16xf32>
    %254 = vector.broadcast %168 : vector<1x32xf32> to vector<8x32xf32>
    %255 = arith.addf %252, %254 : vector<8x32xf32>
    %cst_90 = arith.constant 2.500000e-01 : f32
    %256 = vector.broadcast %cst_90 : f32 to vector<8x16xf32>
    %257 = arith.mulf %253, %256 : vector<8x16xf32>
    %258 = arith.addf %150, %255 : vector<8x32xf32>
    %c0_91 = arith.constant 0 : index
    %c0_92 = arith.constant 0 : index
    %259 = vector.load %arg17[%c0_91, %c0_92] : memref<1x32xf32, #tpu.memory_space<vmem>>, vector<1x32xf32>
    %c0_93 = arith.constant 0 : index
    %c0_94 = arith.constant 0 : index
    %260 = vector.load %arg18[%c0_93, %c0_94] : memref<1x32xf32, #tpu.memory_space<vmem>>, vector<1x32xf32>
    %cst_95 = arith.constant dense<0.000000e+00> : vector<8xf32>
    %261 = vector.multi_reduction <add>, %258, %cst_95 [1] : vector<8x32xf32> to vector<8xf32>
    %262 = vector.shape_cast %261 : vector<8xf32> to vector<8x1xf32>
    %cst_96 = arith.constant 3.200000e+01 : f32
    %263 = vector.broadcast %cst_96 : f32 to vector<8x1xf32>
    %264 = arith.divf %262, %263 : vector<8x1xf32>
    %265 = vector.broadcast %264 : vector<8x1xf32> to vector<8x32xf32>
    %266 = arith.subf %258, %265 : vector<8x32xf32>
    %267 = arith.mulf %266, %266 : vector<8x32xf32>
    %cst_97 = arith.constant dense<0.000000e+00> : vector<8xf32>
    %268 = vector.multi_reduction <add>, %267, %cst_97 [1] : vector<8x32xf32> to vector<8xf32>
    %269 = vector.shape_cast %268 : vector<8xf32> to vector<8x1xf32>
    %cst_98 = arith.constant 3.200000e+01 : f32
    %270 = vector.broadcast %cst_98 : f32 to vector<8x1xf32>
    %271 = arith.divf %269, %270 : vector<8x1xf32>
    %272 = vector.broadcast %264 : vector<8x1xf32> to vector<8x32xf32>
    %273 = arith.subf %258, %272 : vector<8x32xf32>
    %cst_99 = arith.constant 9.99999974E-6 : f32
    %274 = vector.broadcast %cst_99 : f32 to vector<8x1xf32>
    %275 = arith.addf %271, %274 : vector<8x1xf32>
    %276 = math.rsqrt %275 : vector<8x1xf32>
    %277 = vector.broadcast %276 : vector<8x1xf32> to vector<8x32xf32>
    %278 = arith.mulf %273, %277 : vector<8x32xf32>
    %279 = vector.broadcast %259 : vector<1x32xf32> to vector<8x32xf32>
    %280 = arith.mulf %278, %279 : vector<8x32xf32>
    %281 = vector.broadcast %260 : vector<1x32xf32> to vector<8x32xf32>
    %282 = arith.addf %280, %281 : vector<8x32xf32>
    %283 = arith.truncf %282 : vector<8x32xf32> to vector<8x32xbf16>
    %c0_100 = arith.constant 0 : index
    %c0_101 = arith.constant 0 : index
    %284 = vector.load %arg19[%c0_100, %c0_101] : memref<32x64xbf16, #tpu.memory_space<vmem>>, vector<32x64xbf16>
    %cst_102 = arith.constant dense<0.000000e+00> : vector<8x64xf32>
    %285 = tpu.matmul %283, %284, %cst_102 {dimension_numbers = #tpu.dot_dimension_numbers<[1], [0], [0], [1], [0, 0, 1, 1], [], []>} : vector<8x32xbf16>, vector<32x64xbf16>, vector<8x64xf32> -> vector<8x64xf32>
    %c0_103 = arith.constant 0 : index
    %c0_104 = arith.constant 0 : index
    %286 = vector.load %arg20[%c0_103, %c0_104] : memref<1x64xf32, #tpu.memory_space<vmem>>, vector<1x64xf32>
    %287 = vector.broadcast %286 : vector<1x64xf32> to vector<8x64xf32>
    %288 = arith.addf %285, %287 : vector<8x64xf32>
    %cst_105 = arith.constant 0.000000e+00 : f32
    %289 = vector.broadcast %cst_105 : f32 to vector<8x64xf32>
    %290 = arith.maximumf %288, %289 : vector<8x64xf32>
    %291 = arith.truncf %290 : vector<8x64xf32> to vector<8x64xbf16>
    %c0_106 = arith.constant 0 : index
    %c0_107 = arith.constant 0 : index
    %292 = vector.load %arg21[%c0_106, %c0_107] : memref<64x32xbf16, #tpu.memory_space<vmem>>, vector<64x32xbf16>
    %cst_108 = arith.constant dense<0.000000e+00> : vector<8x32xf32>
    %293 = tpu.matmul %291, %292, %cst_108 {dimension_numbers = #tpu.dot_dimension_numbers<[1], [0], [0], [1], [0, 0, 1, 1], [], []>} : vector<8x64xbf16>, vector<64x32xbf16>, vector<8x32xf32> -> vector<8x32xf32>
    %c0_109 = arith.constant 0 : index
    %c0_110 = arith.constant 0 : index
    %294 = vector.load %arg22[%c0_109, %c0_110] : memref<1x32xf32, #tpu.memory_space<vmem>>, vector<1x32xf32>
    %295 = vector.broadcast %294 : vector<1x32xf32> to vector<8x32xf32>
    %296 = arith.addf %293, %295 : vector<8x32xf32>
    %297 = arith.addf %282, %296 : vector<8x32xf32>
    %c0_111 = arith.constant 0 : index
    %c0_112 = arith.constant 0 : index
    %c0_113 = arith.constant 0 : index
    %298 = vector.load %arg23[%c0_111, %c0_112, %c0_113] : memref<1x8x32xf32, #tpu.memory_space<vmem>>, vector<1x8x32xf32>
    %299 = vector.shape_cast %298 : vector<1x8x32xf32> to vector<8x32xf32>
    %300 = vector.shape_cast %297 : vector<8x32xf32> to vector<1x8x32xf32>
    tpu.vector_store %arg23[%c0_111, %c0_112, %c0_113], %300 {strides = array<i32>} : memref<1x8x32xf32, #tpu.memory_space<vmem>>, vector<1x8x32xf32>,
    %c0_114 = arith.constant 0 : index
    %c0_115 = arith.constant 0 : index
    %c0_116 = arith.constant 0 : index
    %301 = vector.load %arg24[%c0_114, %c0_115, %c0_116] : memref<1x8x8xf32, #tpu.memory_space<vmem>>, vector<1x8x8xf32>
    %302 = vector.shape_cast %301 : vector<1x8x8xf32> to vector<8x8xf32>
    %303 = vector.shape_cast %125 : vector<8x8xf32> to vector<1x8x8xf32>
    tpu.vector_store %arg24[%c0_114, %c0_115, %c0_116], %303 {strides = array<i32>} : memref<1x8x8xf32, #tpu.memory_space<vmem>>, vector<1x8x8xf32>,
    %c0_117 = arith.constant 0 : index
    %c0_118 = arith.constant 0 : index
    %c0_119 = arith.constant 0 : index
    %304 = vector.load %arg25[%c0_117, %c0_118, %c0_119] : memref<1x8x16xf32, #tpu.memory_space<vmem>>, vector<1x8x16xf32>
    %305 = vector.shape_cast %304 : vector<1x8x16xf32> to vector<8x16xf32>
    %306 = vector.shape_cast %257 : vector<8x16xf32> to vector<1x8x16xf32>
    tpu.vector_store %arg25[%c0_117, %c0_118, %c0_119], %306 {strides = array<i32>} : memref<1x8x16xf32, #tpu.memory_space<vmem>>, vector<1x8x16xf32>,
    return
  }
  func.func @transform_0(%arg0: i32) -> (i32, i32, i32) {
    %c0_i32 = arith.constant 0 : i32
    %c0_i32_0 = arith.constant 0 : i32
    %c0_i32_1 = arith.constant 0 : i32
    return %arg0, %c0_i32, %c0_i32_0 : i32, i32, i32
  }
  func.func @transform_1(%arg0: i32) -> (i32, i32, i32) {
    %c0_i32 = arith.constant 0 : i32
    %c0_i32_0 = arith.constant 0 : i32
    %c0_i32_1 = arith.constant 0 : i32
    return %arg0, %c0_i32, %c0_i32_0 : i32, i32, i32
  }
  func.func @transform_2(%arg0: i32) -> (i32, i32) {
    %c0_i32 = arith.constant 0 : i32
    %c0_i32_0 = arith.constant 0 : i32
    %c0_i32_1 = arith.constant 0 : i32
    return %c0_i32, %c0_i32_0 : i32, i32
  }
  func.func @transform_3(%arg0: i32) -> (i32, i32) {
    %c0_i32 = arith.constant 0 : i32
    %c0_i32_0 = arith.constant 0 : i32
    %c0_i32_1 = arith.constant 0 : i32
    return %c0_i32, %c0_i32_0 : i32, i32
  }
  func.func @transform_4(%arg0: i32) -> (i32, i32) {
    %c0_i32 = arith.constant 0 : i32
    %c0_i32_0 = arith.constant 0 : i32
    %c0_i32_1 = arith.constant 0 : i32
    return %c0_i32, %c0_i32_0 : i32, i32
  }
  func.func @transform_5(%arg0: i32) -> (i32, i32) {
    %c0_i32 = arith.constant 0 : i32
    %c0_i32_0 = arith.constant 0 : i32
    %c0_i32_1 = arith.constant 0 : i32
    return %c0_i32, %c0_i32_0 : i32, i32
  }
  func.func @transform_6(%arg0: i32) -> (i32, i32) {
    %c0_i32 = arith.constant 0 : i32
    %c0_i32_0 = arith.constant 0 : i32
    %c0_i32_1 = arith.constant 0 : i32
    return %c0_i32, %c0_i32_0 : i32, i32
  }
  func.func @transform_7(%arg0: i32) -> (i32, i32) {
    %c0_i32 = arith.constant 0 : i32
    %c0_i32_0 = arith.constant 0 : i32
    %c0_i32_1 = arith.constant 0 : i32
    return %c0_i32, %c0_i32_0 : i32, i32
  }
  func.func @transform_8(%arg0: i32) -> (i32, i32) {
    %c0_i32 = arith.constant 0 : i32
    %c0_i32_0 = arith.constant 0 : i32
    %c0_i32_1 = arith.constant 0 : i32
    return %c0_i32, %c0_i32_0 : i32, i32
  }
  func.func @transform_9(%arg0: i32) -> (i32, i32) {
    %c0_i32 = arith.constant 0 : i32
    %c0_i32_0 = arith.constant 0 : i32
    %c0_i32_1 = arith.constant 0 : i32
    return %c0_i32, %c0_i32_0 : i32, i32
  }
  func.func @transform_10(%arg0: i32) -> (i32, i32) {
    %c0_i32 = arith.constant 0 : i32
    %c0_i32_0 = arith.constant 0 : i32
    %c0_i32_1 = arith.constant 0 : i32
    return %c0_i32, %c0_i32_0 : i32, i32
  }
  func.func @transform_11(%arg0: i32) -> (i32, i32) {
    %c0_i32 = arith.constant 0 : i32
    %c0_i32_0 = arith.constant 0 : i32
    %c0_i32_1 = arith.constant 0 : i32
    return %c0_i32, %c0_i32_0 : i32, i32
  }
  func.func @transform_12(%arg0: i32) -> (i32, i32) {
    %c0_i32 = arith.constant 0 : i32
    %c0_i32_0 = arith.constant 0 : i32
    %c0_i32_1 = arith.constant 0 : i32
    return %c0_i32, %c0_i32_0 : i32, i32
  }
  func.func @transform_13(%arg0: i32) -> (i32, i32) {
    %c0_i32 = arith.constant 0 : i32
    %c0_i32_0 = arith.constant 0 : i32
    %c0_i32_1 = arith.constant 0 : i32
    return %c0_i32, %c0_i32_0 : i32, i32
  }
  func.func @transform_14(%arg0: i32) -> (i32, i32) {
    %c0_i32 = arith.constant 0 : i32
    %c0_i32_0 = arith.constant 0 : i32
    %c0_i32_1 = arith.constant 0 : i32
    return %c0_i32, %c0_i32_0 : i32, i32
  }
  func.func @transform_15(%arg0: i32) -> (i32, i32) {
    %c0_i32 = arith.constant 0 : i32
    %c0_i32_0 = arith.constant 0 : i32
    %c0_i32_1 = arith.constant 0 : i32
    return %c0_i32, %c0_i32_0 : i32, i32
  }
  func.func @transform_16(%arg0: i32) -> (i32, i32) {
    %c0_i32 = arith.constant 0 : i32
    %c0_i32_0 = arith.constant 0 : i32
    %c0_i32_1 = arith.constant 0 : i32
    return %c0_i32, %c0_i32_0 : i32, i32
  }
  func.func @transform_17(%arg0: i32) -> (i32, i32) {
    %c0_i32 = arith.constant 0 : i32
    %c0_i32_0 = arith.constant 0 : i32
    %c0_i32_1 = arith.constant 0 : i32
    return %c0_i32, %c0_i32_0 : i32, i32
  }
  func.func @transform_18(%arg0: i32) -> (i32, i32) {
    %c0_i32 = arith.constant 0 : i32
    %c0_i32_0 = arith.constant 0 : i32
    %c0_i32_1 = arith.constant 0 : i32
    return %c0_i32, %c0_i32_0 : i32, i32
  }
  func.func @transform_19(%arg0: i32) -> (i32, i32) {
    %c0_i32 = arith.constant 0 : i32
    %c0_i32_0 = arith.constant 0 : i32
    %c0_i32_1 = arith.constant 0 : i32
    return %c0_i32, %c0_i32_0 : i32, i32
  }
  func.func @transform_20(%arg0: i32) -> (i32, i32) {
    %c0_i32 = arith.constant 0 : i32
    %c0_i32_0 = arith.constant 0 : i32
    %c0_i32_1 = arith.constant 0 : i32
    return %c0_i32, %c0_i32_0 : i32, i32
  }
  func.func @transform_21(%arg0: i32) -> (i32, i32) {
    %c0_i32 = arith.constant 0 : i32
    %c0_i32_0 = arith.constant 0 : i32
    %c0_i32_1 = arith.constant 0 : i32
    return %c0_i32, %c0_i32_0 : i32, i32
  }
  func.func @transform_22(%arg0: i32) -> (i32, i32, i32) {
    %c0_i32 = arith.constant 0 : i32
    %c0_i32_0 = arith.constant 0 : i32
    %c0_i32_1 = arith.constant 0 : i32
    return %arg0, %c0_i32, %c0_i32_0 : i32, i32, i32
  }
  func.func @transform_23(%arg0: i32) -> (i32, i32, i32) {
    %c0_i32 = arith.constant 0 : i32
    %c0_i32_0 = arith.constant 0 : i32
    %c0_i32_1 = arith.constant 0 : i32
    return %arg0, %c0_i32, %c0_i32_0 : i32, i32, i32
  }
  func.func @transform_24(%arg0: i32) -> (i32, i32, i32) {
    %c0_i32 = arith.constant 0 : i32
    %c0_i32_0 = arith.constant 0 : i32
    %c0_i32_1 = arith.constant 0 : i32
    return %arg0, %c0_i32, %c0_i32_0 : i32, i32, i32
  }
}

</mosaic_0001>

<bundles_post_ra>
// kernel: decoder_layer_forward.1
= control target key start
LH: loop header
LB: loop body
LE: loop exit
PB: predicated region body
PF: predicated region fallthrough
CT: control target
= control target key end

     0   :  { %s2841_s0 = inlined_call_operand.vmem [shape: f32[2,8,32], index: 0, kind: input, shape index: {}]   ;;  %s2842_s1 = inlined_call_operand.vmem [shape: f32[2,16,32], index: 1, kind: input, shape index: {}]   ;;  %s2843_s2 = inlined_call_operand.vmem [shape: f32[1,32], index: 2, kind: input, shape index: {}]   ;;  %s2844_s3 = inlined_call_operand.vmem [shape: f32[1,32], index: 3, kind: input, shape index: {}]   ;;  %s2845_s4 = inlined_call_operand.vmem [shape: bf16[32,96], index: 4, kind: input, shape index: {}]   ;;  %s2846_s5 = inlined_call_operand.vmem [shape: f32[1,96], index: 5, kind: input, shape index: {}]   ;;  %s2847_s6 = inlined_call_operand.vmem [shape: bf16[32,32], index: 6, kind: input, shape index: {}]   ;;  %s2848_s7 = inlined_call_operand.vmem [shape: f32[1,32], index: 7, kind: input, shape index: {}]   ;;  %s2849_s8 = inlined_call_operand.vmem [shape: f32[1,32], index: 8, kind: input, shape index: {}]   ;;  %s2850_s9 = inlined_call_operand.vmem [shape: f32[1,32], index: 9, kind: input, shape index: {}]   ;;  %s2851_s10 = inlined_call_operand.vmem [shape: bf16[32,32], index: 10, kind: input, shape index: {}]   ;;  %s2852_s11 = inlined_call_operand.vmem [shape: f32[1,32], index: 11, kind: input, shape index: {}]   ;;  %s2853_s12 = inlined_call_operand.vmem [shape: bf16[32,64], index: 12, kind: input, shape index: {}]   ;;  %s2854_s13 = inlined_call_operand.vmem [shape: f32[1,64], index: 13, kind: input, shape index: {}]   ;;  %s2855_s14 = inlined_call_operand.vmem [shape: bf16[32,32], index: 14, kind: input, shape index: {}]   ;;  %s2856_s15 = inlined_call_operand.vmem [shape: f32[1,32], index: 15, kind: input, shape index: {}]   ;;  %s2857_s16 = inlined_call_operand.vmem [shape: f32[1,32], index: 16, kind: input, shape index: {}]   ;;  %s2858_s17 = inlined_call_operand.vmem [shape: f32[1,32], index: 17, kind: input, shape index: {}]   ;;  %s2859_s18 = inlined_call_operand.vmem [shape: bf16[32,64], index: 18, kind: input, shape index: {}]   ;;  %s2860_s19 = inlined_call_operand.vmem [shape: f32[1,64], index: 19, kind: input, shape index: {}]   ;;  %s2861_s20 = inlined_call_operand.vmem [shape: bf16[64,32], index: 20, kind: input, shape index: {}]   ;;  %s2862_s21 = inlined_call_operand.vmem [shape: f32[1,32], index: 21, kind: input, shape index: {}]   ;;  %s2863_s22 = inlined_call_operand.vmem [shape: f32[2,8,32], index: 22, kind: output, shape index: {0}]   ;;  %s2864_s23 = inlined_call_operand.hbm [shape: f32[2,8,8], index: 23, kind: output, shape index: {1}]   ;;  %s2865_s24 = inlined_call_operand.hbm [shape: f32[2,8,16], index: 24, kind: output, shape index: {2}]  }
   0x1   :  { %2889 = sst [smem:[#allocation15_spill]] %s2841_s0 }
   0x2   :  { %2890 = sst [smem:[#allocation16_spill]] %s2842_s1 }
   0x3   :  { %2891 = sst [smem:[#allocation17_spill]] %s2843_s2 }
   0x4   :  { %2892 = sst [smem:[#allocation18_spill]] %s2844_s3 }
   0x5   :  { %2893 = sst [smem:[#allocation19_spill]] %s2845_s4 }
   0x6   :  { %2894 = sst [smem:[#allocation20_spill]] %s2846_s5 }
   0x7   :  { %2895 = sst [smem:[#allocation21_spill]] %s2847_s6 }
   0x8   :  { %2896 = sst [smem:[#allocation22_spill]] %s2848_s7 }
   0x9   :  { %2897 = sst [smem:[#allocation23_spill]] %s2849_s8 }
   0xa   :  { %2898 = sst [smem:[#allocation24_spill]] %s2850_s9 }
   0xb   :  { %2899 = sst [smem:[#allocation25_spill]] %s2851_s10 }
   0xc   :  { %2900 = sst [smem:[#allocation26_spill]] %s2852_s11 }
   0xd   :  { %2901 = sst [smem:[#allocation27_spill]] %s2853_s12 }
   0xe   :  { %2902 = sst [smem:[#allocation28_spill]] %s2854_s13 }
   0xf   :  { %30 = vsyncpa [#allocation3], 0 }
  0x10   :  { %32 = vsyncpa [#allocation3 + $0x1], 0 }
  0x11   :  { %33 = vsyncpa [#allocation5], 0 }
  0x12   :  { %35 = vsyncpa [#allocation5 + $0x1], 0  ;;  %s2458_s5 = smov 0   ;;  %s2460_s26 = smov 0  }
  0x13   :  { %s2462_s27 = smov 0   ;;  %s2464_s28 = smov 0  }
  0x14 LB: > { %2903 = sst [smem:[#allocation8_spill]] %s2307_s5  ;;  %s2479_s6 = sadd.s32 4294967295, %s2319_s28   ;;  %s2319_s28 = sphi %s2464_s28, %s2938_s28   ;;  %s2315_s27 = sphi %s2462_s27, %s2941_s27   ;;  %s2311_s26 = sphi %s2460_s26, %s2940_s26   ;;  %s2307_s5 = sphi %s2458_s5, %s2939_s5  }
  0x15   : > { %2904 = sst [smem:[#allocation9_spill]] %s2311_s26  ;;  %s2010_s2 = sadd.s32 4294967294, %s2319_s28  }
  0x16   : > { %2905 = sst [smem:[#allocation10_spill]] %s2315_s27  ;;  %s2483_s29 = sadd.s32 1, %s2319_s28  }
  0x17   : > { %2906 = sst [smem:[#allocation11_spill]] %s2319_s28  ;;  %s546_s0 = sadd.s32 1, %s2315_s27 }
  0x18   : > { %2907 = sst [smem:[#allocation12_spill]] %s2483_s29  ;;  %s543_s7 = ssub.s32 %s2319_s28, %s2483_s29 }
  0x19   : > { %p556_p0 = scmp.ne.s32.totalorder %s2315_s27, %s2311_s26  ;;  %p544_p1 = scmp.eq.s32.totalorder %s543_s7, 0 }
  0x1a   : > { %p557_p2 = scmp.eq.s32.totalorder %s2479_s6, 1  ;;  %p562_p3 = scmp.ne.s32.totalorder %s2311_s26, %s2307_s5 }
  0x1b   : > { %p563_p4 = scmp.eq.s32.totalorder %s2010_s2, 1  ;;  %p2013_p7 = scmp.ge.s32.totalorder %s2319_s28, 1 }
  0x1c   : > { %s2494_s30 = scalar_select %p544_p1, %s2315_s27, %s546_s0  }
  0x1d   : > { %p2496_p5 = por %p557_p2, %p556_p0  ;;  %p2500_p6 = por %p563_p4, %p562_p3 }
  0x1e   : > { %2908 = sst [smem:[#allocation13_spill]] %s2494_s30  ;;  %p682_p8 = scmp.lt.s32.totalorder %s2319_s28, 3 }
  0x1f   : > { %s2910_s25 = scalar_select %p2500_p6, 1, 0 }
  0x20   : > { %p683_p9 = pnand %p2013_p7, %p682_p8 }
  0x21   : > { %2911 = sst [smem:[#allocation14_spill]] %s2910_s25  ;;  %p761_p10 = scmp.lt.s32.totalorder (!%p683_p9), %s2479_s6, 1 }
  0x22   : > { %686 = sbr.rel (%p683_p9) target bundleno = 3956 (0xf74), region = 108  ;;  %s2912_s0 = sld [smem:[#allocation15_spill]] (!%p683_p9) }
  0x23   : > { %s2914_s30 = sld [smem:[#allocation17_spill]] (!%p683_p9)  ;;  %s2875_s1 = smov (!%p683_p9), 80  }
  0x24   : > { %s2916_s25 = sld [smem:[#allocation20_spill]] (!%p683_p9)  ;;  %s2882_s27 = smov (!%p683_p9), 112  }
  0x25   : > { %s2326_s29 = smov (!%p683_p9), 64   ;;  %s2876_s2 = smov (!%p683_p9), 72  }
  0x26   : > { %s2920_s12 = sld [smem:[#allocation27_spill]] (!%p683_p9)  ;;  %s2931_s5 = smov (!%p683_p9), 88  }
  0x27   : > { %s2508_s8 = scalar_select %p761_p10, %s2479_s6, 1  ;;  %vm778_vm0 = vcmask 261120   ;;  %v2321_v2 = vmov 32.0   ;;  %vm864_vm5 = vcmask 64512   ;;  %vm914_vm6 = vcmask 1043456  }
  0x28   : > { %2185 = vrcp.f32 %v2321_v2  ;;  %s2921_s10 = sld [smem:[#allocation25_spill]]  ;;  %s2932_s28 = smov 72  }
  0x29   : > { %s2868_s4 = sshll.u32 %s2508_s8, 3  ;;  %v2172_v25 = vld [vmem:[%s2914_s30] ss:$0 sm:$0xff]  ;;  %s2874_s30 = smov 88  }
  0x2a   : > { %s764_s7 = scalar_lea.vmem %s2912_s0, %s2868_s4  ;;  %s2913_s0 = sld [smem:[#allocation19_spill]]  ;;  %v2174_v32 = vld [vmem:[%s2916_s25] ss:$0 sm:$0xff] }
  0x2b   : > { %v775_v0 = vld [vmem:[%s764_s7] sm:$0xff]  ;;  %s2880_s25 = smov 120   ;;  %s2877_s4 = smov 104  }
  0x2c   : > { %v779_v1 = vsel %vm778_vm0, %v775_v0, 0.0  ;;  %s2332_s7 = smov 56   ;;  %s2922_s13 = sld [smem:[#allocation28_spill]] }
  0x2d   : > { %780 = vadd.xlane.f32.xlu0 %v779_v1  ;;  %s2925_s9 = sld [smem:[#allocation24_spill]] }
  0x2e   : > { %v2186_v3 = vpop.eup %2185  ;;  %s2927_s11 = sld [smem:[#allocation26_spill]] }
  0x2f   : > { %v783_v4 = vmul.f32 32.0, %v2186_v3  ;;  %vm787_vm1 = vweird.f32 %v2186_v3 }
  0x30   : > { %v2105_v14 = vld [vmem:[%s2913_s0 + $0x8] sm:$0xff]  ;;  %v2104_v15 = vld [vmem:[%s2913_s0] sm:$0xff]  ;;  %s2915_s0 = sld [smem:[#allocation18_spill]] }
  0x31   : > { %v784_v5 = vsub.f32 1.0, %v783_v4  ;;  %846 = vmatpush.bf16.msra.mxu0 %v2105_v14 }
  0x33   : > { %v785_v6 = vmul.f32 %v2186_v3, %v784_v5 }
  0x35   : > { %v786_v7 = vadd.f32 %v2186_v3, %v785_v6  ;;  %847 = vmatpush.bf16.msra.mxu0 %v2104_v15 }
  0x36   : > { %v2173_v28 = vld [vmem:[%s2915_s0] ss:$0 sm:$0xff]  ;;  %s2884_s0 = smov 96  }
  0x37   : > { %v2517_v8 = vsel %vm787_vm1, %v2186_v3, %v786_v7 }
  0xa0   : > { %v781_v9 = vpop.xlane.xlu0 %780 }
  0xa1   : > { %v789_v10 = vmul.f32 %v2517_v8, %v781_v9 }
  0xa3   : > { %v790_v11 = vsub.f32 %v775_v0, %v789_v10 }
  0xa5   : > { %v791_v12 = vmul.f32 %v790_v11, %v790_v11 }
  0xa7   : > { %v792_v13 = vsel %vm778_vm0, %v791_v12, 0.0 }
  0xa8   : > { %793 = vadd.xlane.f32.xlu0 %v792_v13 }
 0x11b   : > { %v794_v16 = vpop.xlane.xlu0 %793 }
 0x11c   : > { %v795_v17 = vmul.f32 %v794_v16, %v2517_v8 }
 0x11e   : > { %v796_v18 = vadd.f32 1e-05, %v795_v17 }
 0x120   : > { %2187 = vrsqrt.f32 %v796_v18  ;;  %vm803_vm3 = vweird.f32 %v796_v18 }
 0x126   : > { %v2188_v19 = vpop.eup %2187 }
 0x127   : > { %v798_v20 = vmul.f32 %v2188_v19, %v796_v18  ;;  %vm804_vm2 = vweird.f32 %v2188_v19 }
 0x128   : > { %vm805_vm4 = vmor %vm803_vm3, %vm804_vm2 }
 0x129   : > { %v799_v21 = vmul.f32 %v2188_v19, %v798_v20 }
 0x12b   : > { %v800_v22 = vmul.f32 0.5, %v799_v21 }
 0x12d   : > { %v801_v23 = vsub.f32 1.5, %v800_v22 }
 0x12f   : > { %v802_v24 = vmul.f32 %v2188_v19, %v801_v23 }
 0x131   : > { %v806_v26 = vsel %vm805_vm4, %v2188_v19, %v802_v24 }
 0x132   : > { %v807_v27 = vmul.f32 %v806_v26, %v790_v11 }
 0x134   : > { %v811_v29 = vmul.f32 %v2172_v25, %v807_v27 }
 0x136   : > { %v2534_v30 = vadd.f32 %v2173_v28, %v811_v29 }
 0x138   : > { %v816_v31 = vpack.c.bf16 %v2534_v30, %v2534_v30 }
 0x13a   : > { %2028 = vmatmul.msk.bf16.vlgmr.msra.gmra.mxu0 %vm778_vm0, %v816_v31 }
 0x1b7   : > { %v849_v33 = vpop.f32.mrf.mxu0 }
 0x1b8   : > { %v850_v34 = vadd.f32 %v2174_v32, %v849_v33 }
 0x1ba   : > { %v858_v35 = vpack.c.bf16 %v850_v34, %v850_v34 }
 0x1bc   : > { %v860_v36 = vunpack.c.l.b16 %v858_v35 }
 0x1be   : > { %v2542_v37 = vpack.c.b16 %v860_v36, %v860_v36 }
 0x1bf   : > { %v851_v38 = vpop.f32.mrf.mxu0 }
 0x1c0   : > { %935 = vrot.lane.b32.xlu0 %v2542_v37, %s2874_s30  ;;  %862 = vrot.lane.b32.xlu1 %v2542_v37, %s2884_s0  ;;  %s2330_s30 = smov 48  }
 0x1c8   : > { %1044 = vrot.lane.b32.xlu0 %v2542_v37, %s2875_s1  ;;  %s2917_s1 = sld [smem:[#allocation21_spill]] }
 0x1ce   : > { %v853_v53 = vld [vmem:[%s2917_s1] sm:$0xf] }
 0x1cf   : > { %v1026_v54 = vsel %vm914_vm6, %v853_v53, 0 }
 0x1d0   : > { %1042 = vrot.lane.b32.xlu0 %v2542_v37, %s2882_s27  ;;  %s2924_s27 = sld [smem:[#allocation23_spill]] }
 0x232   : > { %v936_v39 = vpop.permute.xlu0 %935  ;;  %v863_v40 = vpop.permute.xlu1 %862 }
 0x233   : > { %v869_v41 = vsel %vm864_vm5, %v863_v40, 0  ;;  %v941_v42 = vsel %vm864_vm5, %v936_v39, 0 }
 0x234   : > { %878 = vmatpush.bf16.xpose.msra.mxu1 %v869_v41  ;;  %950 = vmatpush.bf16.xpose.msra.mxu3 %v941_v42 }
 0x23a   : > { %v1045_v43 = vpop.permute.xlu0 %1044 }
 0x23b   : > { %2029 = vmatmul.msk.bf16.vlgmr.msra.gmra.mxu1 %vm864_vm5, %v858_v35  ;;  %v1050_v44 = vsel %vm864_vm5, %v1045_v43, 0 }
 0x23c   : > { %1059 = vmatpush.bf16.xpose.msrb.mxu3 %v1050_v44  ;;  %1035 = vmatpush.bf16.msrb.mxu1 %v1026_v54 }
 0x242   : > { %v1043_v10 = vpop.permute.xlu0 %1042 }
 0x2b8   : > { %v880_v45 = vpop.f32.mrf.mxu1 }
 0x2b9   : > { %v884_v46 = vsel %vm864_vm5, %v880_v45, -inf }
 0x2ba   : > { %885 = vmax.xlane.f32.xlu1 %v884_v46 }
 0x2c0   : > { %v882_v47 = vpop.f32.mrf.mxu1 }
 0x32d   : > { %v886_v48 = vpop.xlane.xlu1 %885 }
 0x32e   : > { %v887_v49 = vsub.f32 %v880_v45, %v886_v48 }
 0x330   : > { %v888_v50 = vmul.f32 1.442695, %v887_v49 }
 0x332   : > { %2189 = vpow2.f32 %v888_v50 }
 0x338   : > { %v2190_v51 = vpop.eup %2189 }
 0x339   : > { %v890_v52 = vsel %vm864_vm5, %v2190_v51, 0.0 }
 0x33a   : > { %891 = vadd.xlane.f32.xlu2 %v890_v52 }
 0x352   : > { %909 = vrot.lane.b32.xlu2 %v2542_v37, %s2326_s29  ;;  %s2331_s29 = smov 40  }
 0x35a   : > { %933 = vrot.lane.b32.xlu2 %v2542_v37, %s2880_s25  ;;  %s2918_s25 = sld [smem:[#allocation22_spill]] }
 0x362   : > { %1135 = vrot.lane.b32.xlu2 %v2542_v37, %s2876_s2  ;;  %s2103_s2 = sshll.u32 %s2508_s8, 4 }
 0x36a   : > { %1133 = vrot.lane.b32.xlu2 %v2542_v37, %s2877_s4  ;;  %s2923_s4 = smov 96  }
 0x3ad   : > { %v892_v55 = vpop.xlane.xlu2 %891 }
 0x3ae   : > { %2191 = vrcp.f32 %v892_v55  ;;  %v904_v61 = vand.u32 2147483648, %v892_v55  ;;  %v902_v63 = vand.u32 2147483647, %v892_v55  ;;  %vm898_vm8 = vweird.f32 %v892_v55 }
 0x3b0   : > { %v905_v1 = vor.u32 1.1754944e-38, %v904_v61  ;;  %vm903_vm10 = vcmp.eq.f32.partialorder %v902_v63, 8.507059e+37 }
 0x3b4   : > { %v2192_v56 = vpop.eup %2191 }
 0x3b5   : > { %v894_v57 = vmul.f32 %v2192_v56, %v892_v55  ;;  %v910_v58 = vpop.permute.xlu2 %909  ;;  %vm899_vm7 = vweird.f32 %v2192_v56 }
 0x3b6   : > { %v916_v59 = vsel %vm914_vm6, %v910_v58, 0  ;;  %vm900_vm9 = vmor %vm898_vm8, %vm899_vm7 }
 0x3b7   : > { %v895_v60 = vsub.f32 1.0, %v894_v57  ;;  %925 = vmatpush.bf16.msra.mxu2 %v916_v59 }
 0x3b9   : > { %v896_v62 = vmul.f32 %v2192_v56, %v895_v60 }
 0x3bb   : > { %v897_v0 = vadd.f32 %v2192_v56, %v896_v62 }
 0x3bd   : > { %v934_v2 = vpop.permute.xlu2 %933  ;;  %v901_v3 = vsel %vm900_vm9, %v2192_v56, %v897_v0 }
 0x3be   : > { %2031 = vmatmul.msk.bf16.vlgmr.msra.gmra.mxu3 %vm864_vm5, %v934_v2  ;;  %v906_v4 = vsel %vm903_vm10, %v905_v1, %v901_v3 }
 0x3bf   : > { %v2571_v5 = vmul.f32 %v2190_v51, %v906_v4 }
 0x3c1   : > { %v908_v6 = vpack.c.bf16 %v2571_v5, %v2571_v5 }
 0x3c3   : > { %2030 = vmatmul.msk.bf16.vlgmr.msra.gmra.mxu2 %vm864_vm5, %v908_v6 }
 0x3c5   : > { %v1136_v7 = vpop.permute.xlu2 %1135 }
 0x3c6   : > { %v1141_v9 = vsel %vm864_vm5, %v1136_v7, 0 }
 0x3c7   : > { %1150 = vmatpush.bf16.xpose.msra.mxu1 %v1141_v9 }
 0x3cd   : > { %v1134_v19 = vpop.permute.xlu2 %1133 }
 0x3ce   : > { %2035 = vmatmul.msk.bf16.vlgmr.msrb.gmra.mxu3 %vm864_vm5, %v1043_v10 }
 0x441   : > { %v952_v11 = vpop.f32.mrf.mxu3 }
 0x442   : > { %v956_v12 = vsel %vm864_vm5, %v952_v11, -inf }
 0x443   : > { %957 = vmax.xlane.f32.xlu1 %v956_v12 }
 0x446   : > { %v927_v13 = vpop.f32.mrf.mxu2 }
 0x447   : > { %v931_v14 = vpack.c.bf16 %v927_v13, %v927_v13 }
 0x449   : > { %v954_v15 = vpop.f32.mrf.mxu3  ;;  %2034 = vmatmul.msk.bf16.vlgmr.msrb.gmra.mxu1 %vm864_vm5, %v931_v14 }
 0x44e   : > { %v929_v16 = vpop.f32.mrf.mxu2 }
 0x451   : > { %v1061_v17 = vpop.f32.mrf.mxu3 }
 0x452   : > { %v1065_v18 = vsel %vm864_vm5, %v1061_v17, -inf }
 0x453   : > { %1066 = vmax.xlane.f32.xlu2 %v1065_v18 }
 0x459   : > { %v1063_v20 = vpop.f32.mrf.mxu3  ;;  %2038 = vmatmul.msk.bf16.vlgmr.msra.gmra.mxu1 %vm864_vm5, %v1134_v19 }
 0x46b   : > { %1090 = vrot.lane.b32.xlu2 %v2542_v37, %s2330_s30  ;;  %s2601_s30 = sand.u32 1, %s2311_s26  }
 0x4b6   : > { %v958_v21 = vpop.xlane.xlu1 %957 }
 0x4b7   : > { %v959_v22 = vsub.f32 %v952_v11, %v958_v21 }
 0x4b9   : > { %v960_v23 = vmul.f32 1.442695, %v959_v22 }
 0x4bb   : > { %2193 = vpow2.f32 %v960_v23 }
 0x4c1   : > { %v2583_v24 = vpop.eup %2193 }
 0x4c2   : > { %v962_v25 = vsel %vm864_vm5, %v2583_v24, 0.0 }
 0x4c3   : > { %963 = vadd.xlane.f32.xlu1 %v962_v25 }
 0x4c6   : > { %v1067_v26 = vpop.xlane.xlu2 %1066  ;;  %v2587_v27 = vpop.f32.mrf.mxu1 }
 0x4c7   : > { %v1068_v28 = vsub.f32 %v1061_v17, %v1067_v26 }
 0x4c9   : > { %v1069_v29 = vmul.f32 1.442695, %v1068_v28 }
 0x4cb   : > { %2195 = vpow2.f32 %v1069_v29  ;;  %v856_v29 = vld [vmem:[%s2917_s1 + $0xc] sm:$0xf] }
 0x4ce   : > { %v1039_v31 = vpop.f32.mrf.mxu1  ;;  %v1091_v23 = vpop.permute.xlu2 %1090 }
 0x4cf   : > { %v1207_v31 = vsel %vm914_vm6, %v856_v29, 0 }
 0x4d1   : > { %v2589_v32 = vpop.eup %2195 }
 0x4d2   : > { %v1071_v33 = vsel %vm864_vm5, %v2589_v32, 0.0 }
 0x4d3   : > { %1072 = vadd.xlane.f32.xlu1 %v1071_v33 }
 0x4d6   : > { %v1152_v34 = vpop.f32.mrf.mxu1 }
 0x4d7   : > { %v1156_v35 = vsel %vm864_vm5, %v1152_v34, -inf }
 0x4d8   : > { %1157 = vmax.xlane.f32.xlu0 %v1156_v35 }
 0x4de   : > { %v1154_v36 = vpop.f32.mrf.mxu1 }
 0x4ec   : > { %1181 = vrot.lane.b32.xlu0 %v2542_v37, %s2331_s29  ;;  %s2879_s29 = sshll.u32 %s2601_s30, 3 }
 0x536   : > { %v964_v45 = vpop.xlane.xlu1 %963 }
 0x537   : > { %v976_v57 = vand.u32 2147483648, %v964_v45  ;;  %vm970_vm12 = vweird.f32 %v964_v45  ;;  %v974_v58 = vand.u32 2147483647, %v964_v45 }
 0x539   : > { %v977_v63 = vor.u32 1.1754944e-38, %v976_v57  ;;  %vm975_vm2 = vcmp.eq.f32.partialorder %v974_v58, 8.507059e+37 }
 0x546   : > { %v1073_v46 = vpop.xlane.xlu1 %1072 }
 0x547   : > { %v1085_v59 = vand.u32 2147483648, %v1073_v46  ;;  %vm1079_vm15 = vweird.f32 %v1073_v46  ;;  %v1083_v61 = vand.u32 2147483647, %v1073_v46 }
 0x549   : > { %v1086_v2 = vor.u32 1.1754944e-38, %v1085_v59  ;;  %vm1084_vm3 = vcmp.eq.f32.partialorder %v1083_v61, 8.507059e+37 }
 0x54b   : > { %v1158_v38 = vpop.xlane.xlu0 %1157 }
 0x54c   : > { %v1159_v39 = vsub.f32 %v1152_v34, %v1158_v38  ;;  %v855_v34 = vld [vmem:[%s2917_s1 + $0x8] sm:$0xf] }
 0x54d   : > { %v1116_v35 = vsel %vm914_vm6, %v855_v34, 0 }
 0x54e   : > { %v1160_v40 = vmul.f32 1.442695, %v1159_v39 }
 0x550   : > { %2197 = vpow2.f32 %v1160_v40 }
 0x551   : > { %2199 = vrcp.f32 %v964_v45 }
 0x552   : > { %2201 = vrcp.f32 %v1073_v46 }
 0x556   : > { %v2198_v41 = vpop.eup %2197 }
 0x557   : > { %v1162_v42 = vsel %vm864_vm5, %v2198_v41, 0.0  ;;  %v2200_v47 = vpop.eup %2199 }
 0x558   : > { %1163 = vadd.xlane.f32.xlu1 %v1162_v42  ;;  %v2202_v48 = vpop.eup %2201  ;;  %v966_v49 = vmul.f32 %v2200_v47, %v964_v45  ;;  %vm971_vm11 = vweird.f32 %v2200_v47 }
 0x559   : > { %v1075_v50 = vmul.f32 %v2202_v48, %v1073_v46  ;;  %vm1080_vm13 = vweird.f32 %v2202_v48  ;;  %vm972_vm14 = vmor %vm970_vm12, %vm971_vm11 }
 0x55a   : > { %v967_v51 = vsub.f32 1.0, %v966_v49  ;;  %vm1081_vm1 = vmor %vm1079_vm15, %vm1080_vm13  ;;  %vm1371_vm13 = vcmask 130048  }
 0x55b   : > { %v1076_v52 = vsub.f32 1.0, %v1075_v50 }
 0x55c   : > { %v968_v53 = vmul.f32 %v2200_v47, %v967_v51 }
 0x55d   : > { %v1077_v54 = vmul.f32 %v2202_v48, %v1076_v52 }
 0x55e   : > { %v1182_v43 = vpop.permute.xlu0 %1181  ;;  %v969_v56 = vadd.f32 %v2200_v47, %v968_v53  ;;  %v2175_v53 = vld [vmem:[%s2918_s25] ss:$0 sm:$0xff] }
 0x55f   : > { %v1187_v44 = vsel %vm914_vm6, %v1182_v43, 0 }
 0x560   : > { %1196 = vmatpush.bf16.msra.mxu3 %v1187_v44  ;;  %v973_v60 = vsel %vm972_vm14, %v2200_v47, %v969_v56 }
 0x561   : > { %v978_v3 = vsel %vm975_vm2, %v977_v63, %v973_v60 }
 0x562   : > { %v979_v11 = vmul.f32 %v2583_v24, %v978_v3  ;;  %v2106_v3 = vld [vmem:[%s2921_s10] sm:$0xff] }
 0x564   : > { %v1041_v16 = vadd.f32 %v979_v11, %v2571_v5  ;;  %v1096_v5 = vsel %vm914_vm6, %v1091_v23, 0  ;;  %v980_v26 = vpack.c.bf16 %v979_v11, %v979_v11 }
 0x571   : > { %981 = vrot.lane.b32.xlu1 %v2542_v37, %s2332_s7  ;;  %v1078_v37 = vadd.f32 %v2202_v48, %v1077_v54  ;;  %s2608_s7 = scalar_lea.vmem [#allocation2], %s2879_s29 }
 0x573   : > { %v1082_v0 = vsel %vm1081_vm1, %v2202_v48, %v1078_v37 }
 0x574   : > { %v1087_v6 = vsel %vm1084_vm3, %v1086_v2, %v1082_v0  ;;  %v2107_v2 = vld [vmem:[%s2921_s10 + $0x8] sm:$0xff] }
 0x575   : > { %v1088_v12 = vmul.f32 %v2589_v32, %v1087_v6  ;;  %v854_v32 = vld [vmem:[%s2917_s1 + $0x4] sm:$0xf]  ;;  %s2919_s1 = sld [smem:[#allocation16_spill]] }
 0x576   : > { %v1007_v33 = vsel %vm914_vm6, %v854_v32, 0 }
 0x577   : > { %v1132_v19 = vadd.f32 %v1088_v12, %v1041_v16  ;;  %v1089_v28 = vpack.c.bf16 %v1088_v12, %v1088_v12  ;;  %1016 = vmatpush.bf16.msrb.mxu0 %v1007_v33 }
 0x57b   : > { %1125 = vmatpush.bf16.msra.mxu0 %v1116_v35  ;;  %s769_s26 = scalar_lea.vmem %s2919_s1, %s2103_s2  ;;  %v2179_v35 = vld [vmem:[%s2927_s11] ss:$0 sm:$0xff]  ;;  %s2928_s2 = smov 120  }
 0x57c   : > { %v1299_v37 = vld [vmem:[%s769_s26] sm:$0xff]  ;;  %v1300_v59 = vld [vmem:[%s769_s26 + $0x8] sm:$0xff]  ;;  %s2926_s26 = smov 112   ;;  %s2245_s1 = scalar_lea.hbm %s2864_s23, 16 }
 0x57d   : > { %v1301_v60 = vpack.c.bf16 %v1300_v59, %v1299_v37 }
 0x5cb   : > { %v1164_v55 = vpop.xlane.xlu1 %1163 }
 0x5cc   : > { %2203 = vrcp.f32 %v1164_v55  ;;  %v1176_v7 = vand.u32 2147483648, %v1164_v55  ;;  %v1174_v10 = vand.u32 2147483647, %v1164_v55  ;;  %vm1170_vm7 = vweird.f32 %v1164_v55 }
 0x5ce   : > { %v1177_v14 = vor.u32 1.1754944e-38, %v1176_v7  ;;  %vm1175_vm9 = vcmp.eq.f32.partialorder %v1174_v10, 8.507059e+37 }
 0x5d2   : > { %v2204_v62 = vpop.eup %2203 }
 0x5d3   : > { %v1166_v1 = vmul.f32 %v2204_v62, %v1164_v55  ;;  %vm1171_vm4 = vweird.f32 %v2204_v62 }
 0x5d4   : > { %vm1172_vm8 = vmor %vm1170_vm7, %vm1171_vm4 }
 0x5d5   : > { %v1167_v4 = vsub.f32 1.0, %v1166_v1 }
 0x5d7   : > { %v1168_v9 = vmul.f32 %v2204_v62, %v1167_v4  ;;  %v2178_v4 = vld [vmem:[%s2922_s13] ss:$0 sm:$0xff] }
 0x5d9   : > { %v1169_v13 = vadd.f32 %v2204_v62, %v1168_v9 }
 0x5db   : > { %v1173_v15 = vsel %vm1172_vm8, %v2204_v62, %v1169_v13 }
 0x5dc   : > { %v1178_v17 = vsel %vm1175_vm9, %v1177_v14, %v1173_v15 }
 0x5dd   : > { %v1179_v18 = vmul.f32 %v2198_v41, %v1178_v17 }
 0x5df   : > { %v1180_v20 = vpack.c.bf16 %v1179_v18, %v1179_v18  ;;  %v1223_v21 = vadd.f32 %v1179_v18, %v1132_v19 }
 0x5e1   : > { %2039 = vmatmul.msk.bf16.vlgmr.msra.gmra.mxu3 %vm864_vm5, %v1180_v20  ;;  %v1228_v22 = vmul.f32 0.25, %v1223_v21 }
 0x5e3   : > { %v982_v24 = vpop.permute.xlu1 %981  ;;  %1838 = vst.msk [vmem:[%s2608_s7] sm:$0xff] %vm864_vm5, %v1228_v22 }
 0x5e4   : > { %v987_v25 = vsel %vm914_vm6, %v982_v24, 0 }
 0x5e5   : > { %996 = vmatpush.bf16.msrb.mxu2 %v987_v25 }
 0x5e8   : > { %2032 = vmatmul.msk.bf16.vlgmr.msrb.gmra.mxu2 %vm864_vm5, %v980_v26 }
 0x5e9   : > { %1105 = vmatpush.bf16.msra.mxu2 %v1096_v5  ;;  %v2176_v5 = vld [vmem:[%s2924_s27] ss:$0 sm:$0xff]  ;;  %s2930_s27 = smov 80  }
 0x5ed   : > { %1216 = vmatpush.bf16.msrb.mxu2 %v1207_v31 }
 0x5f8   : > { %2036 = vmatmul.msk.bf16.vlgmr.msra.gmra.mxu2 %vm864_vm5, %v1089_v28  ;;  %v2177_v28 = vld [vmem:[%s2925_s9] ss:$0 sm:$0xff]  ;;  %s1845_s9 = scalar_lea.sflag [#allocation3], %s2601_s30 }
 0x664   : > { %v1198_v36 = vpop.f32.mrf.mxu3 }
 0x665   : > { %v1202_v38 = vpack.c.bf16 %v1198_v36, %v1198_v36 }
 0x667   : > { %2040 = vmatmul.msk.bf16.vlgmr.msrb.gmra.mxu2 %vm864_vm5, %v1202_v38 }
 0x66b   : > { %v998_v39 = vpop.f32.mrf.mxu2 }
 0x66c   : > { %v1002_v40 = vpack.c.bf16 %v998_v39, %v998_v39  ;;  %v1200_v41 = vpop.f32.mrf.mxu3 }
 0x66e   : > { %2033 = vmatmul.msk.bf16.vlgmr.msrb.gmra.mxu0 %vm864_vm5, %v1002_v40 }
 0x66f   : > { %1292 = vmatpush.bf16.msrb.mxu0 %v2107_v2 }
 0x673   : > { %v1000_v42 = vpop.f32.mrf.mxu2  ;;  %1293 = vmatpush.bf16.msrb.mxu0 %v2106_v3 }
 0x67b   : > { %v1107_v43 = vpop.f32.mrf.mxu2 }
 0x67c   : > { %v1111_v44 = vpack.c.bf16 %v1107_v43, %v1107_v43 }
 0x67e   : > { %2037 = vmatmul.msk.bf16.vlgmr.msra.gmra.mxu0 %vm864_vm5, %v1111_v44 }
 0x683   : > { %v1109_v45 = vpop.f32.mrf.mxu2 }
 0x6ea   : > { %v1218_v46 = vpop.f32.mrf.mxu2 }
 0x6eb   : > { %v1018_v47 = vpop.f32.mrf.mxu0 }
 0x6ec   : > { %v1038_v50 = vadd.f32 %v2587_v27, %v1018_v47  ;;  %v2109_v27 = vld [vmem:[%s2920_s12 + $0x8] sm:$0xff] }
 0x6ed   : > { %1331 = vmatpush.bf16.msrb.mxu1 %v2109_v27 }
 0x6f2   : > { %v1220_v48 = vpop.f32.mrf.mxu2 }
 0x6f3   : > { %v1020_v49 = vpop.f32.mrf.mxu0 }
 0x6fb   : > { %v1127_v51 = vpop.f32.mrf.mxu0 }
 0x6fc   : > { %v1131_v52 = vadd.f32 %v1127_v51, %v1038_v50 }
 0x6fe   : > { %v1222_v54 = vadd.f32 %v1218_v46, %v1131_v52  ;;  %v1339_v52 = vld [vmem:[%s2855_s14] sm:$0xf] }
 0x700   : > { %v1227_v55 = vadd.f32 %v2175_v53, %v1222_v54  ;;  %v1512_v53 = vsel %vm914_vm6, %v1339_v52, 0 }
 0x702   : > { %v1229_v56 = vadd.f32 %v1227_v55, %v2534_v30  ;;  %v2108_v30 = vld [vmem:[%s2920_s12] sm:$0xff] }
 0x703   : > { %v1129_v57 = vpop.f32.mrf.mxu0  ;;  %1332 = vmatpush.bf16.msrb.mxu1 %v2108_v30 }
 0x704   : > { %v1232_v58 = vsel %vm778_vm0, %v1229_v56, 0.0 }
 0x705   : > { %1233 = vadd.xlane.f32.xlu1 %v1232_v58 }
 0x706   : > { %2058 = vmatmul.msk.bf16.vlgmr.msrb.gmra.mxu1 %vm778_vm0, %v1301_v60 }
 0x778   : > { %v1234_v61 = vpop.xlane.xlu1 %1233 }
 0x779   : > { %v1235_v62 = vmul.f32 %v1234_v61, %v2517_v8 }
 0x77b   : > { %v1236_v63 = vsub.f32 %v1229_v56, %v1235_v62 }
 0x77d   : > { %v1237_v0 = vmul.f32 %v1236_v63, %v1236_v63 }
 0x77f   : > { %v1238_v1 = vsel %vm778_vm0, %v1237_v0, 0.0 }
 0x780   : > { %1239 = vadd.xlane.f32.xlu0 %v1238_v1 }
 0x783   : > { %v1334_v6 = vpop.f32.mrf.mxu1 }
 0x784   : > { %v1335_v10 = vadd.f32 %v2178_v4, %v1334_v6 }
 0x786   : > { %v1345_v12 = vpack.c.bf16 %v1335_v10, %v1335_v10 }
 0x788   : > { %v1349_v15 = vunpack.c.l.b16 %v1345_v12 }
 0x78b   : > { %v1336_v13 = vpop.f32.mrf.mxu1 }
 0x78c   : > { %v1337_v14 = vadd.f32 %v2178_v4, %v1336_v13 }
 0x78e   : > { %v1346_v16 = vpack.c.bf16 %v1337_v14, %v1337_v14 }
 0x790   : > { %v1350_v19 = vunpack.c.l.b16 %v1346_v16 }
 0x792   : > { %v2660_v21 = vpack.c.b16 %v1350_v19, %v1349_v15 }
 0x794   : > { %1397 = vrot.lane.b32.xlu0 %v2660_v21, %s2923_s4  ;;  %v1356_v23 = vsel %vm864_vm5, %v2660_v21, 0  ;;  %s2929_s4 = smov 104  }
 0x795   : > { %1365 = vmatpush.bf16.xpose.msrb.mxu3 %v1356_v23 }
 0x79c   : > { %1530 = vrot.lane.b32.xlu0 %v2660_v21, %s2926_s26 }
 0x7f3   : > { %v1240_v7 = vpop.xlane.xlu0 %1239 }
 0x7f4   : > { %v1241_v9 = vmul.f32 %v1240_v7, %v2517_v8 }
 0x7f6   : > { %v1242_v11 = vadd.f32 1e-05, %v1241_v9 }
 0x7f8   : > { %2205 = vrsqrt.f32 %v1242_v11  ;;  %vm1249_vm11 = vweird.f32 %v1242_v11 }
 0x7fe   : > { %v2206_v17 = vpop.eup %2205 }
 0x7ff   : > { %v1244_v18 = vmul.f32 %v2206_v17, %v1242_v11  ;;  %vm1250_vm10 = vweird.f32 %v2206_v17 }
 0x800   : > { %vm1251_vm12 = vmor %vm1249_vm11, %vm1250_vm10 }
 0x801   : > { %v1245_v20 = vmul.f32 %v2206_v17, %v1244_v18 }
 0x803   : > { %v1246_v22 = vmul.f32 0.5, %v1245_v20 }
 0x805   : > { %v1247_v24 = vsub.f32 1.5, %v1246_v22 }
 0x806   : > { %v1398_v34 = vpop.permute.xlu0 %1397 }
 0x807   : > { %v1248_v25 = vmul.f32 %v2206_v17, %v1247_v24  ;;  %1410 = vmatpush.bf16.msra.mxu2 %v1398_v34 }
 0x809   : > { %v1252_v26 = vsel %vm1251_vm12, %v2206_v17, %v1248_v25 }
 0x80a   : > { %v1253_v29 = vmul.f32 %v1252_v26, %v1236_v63 }
 0x80b   : > { %1521 = vmatpush.bf16.msrb.mxu2 %v1512_v53 }
 0x80c   : > { %v1257_v31 = vmul.f32 %v2176_v5, %v1253_v29 }
 0x80e   : > { %v2674_v32 = vadd.f32 %v2177_v28, %v1257_v31  ;;  %v1531_v63 = vpop.permute.xlu0 %1530 }
 0x80f   : > { %v1536_v2 = vsel %vm864_vm5, %v1531_v63, 0 }
 0x810   : > { %v1262_v33 = vpack.c.bf16 %v2674_v32, %v2674_v32 }
 0x812   : > { %2049 = vmatmul.msk.bf16.vlgmr.msrb.gmra.mxu0 %vm778_vm0, %v1262_v33 }
 0x88f   : > { %v1295_v36 = vpop.f32.mrf.mxu0 }
 0x890   : > { %v1296_v38 = vadd.f32 %v2179_v35, %v1295_v36 }
 0x892   : > { %v1344_v39 = vpack.c.bf16 %v1296_v38, %v1296_v38 }
 0x894   : > { %v1419_v40 = vunpack.c.l.b16 %v1344_v39  ;;  %2059 = vmatmul.msk.bf16.vlgmr.msrb.gmra.mxu3 %vm864_vm5, %v1344_v39 }
 0x896   : > { %v1420_v41 = vpack.c.b16 %v1419_v40, %v1419_v40 }
 0x897   : > { %v1297_v42 = vpop.f32.mrf.mxu0 }
 0x898   : > { %1528 = vrot.lane.b32.xlu0 %v1420_v41, %s2926_s26  ;;  %s2099_s26 = sshll.u32 %s2479_s6, 3 }
 0x90a   : > { %v1529_v7 = vpop.permute.xlu0 %1528 }
 0x917   : > { %v1367_v43 = vpop.f32.mrf.mxu3 }
 0x918   : > { %v1372_v44 = vsel %vm1371_vm13, %v1367_v43, -inf }
 0x919   : > { %1373 = vmax.xlane.f32.xlu2 %v1372_v44 }
 0x91f   : > { %v1369_v45 = vpop.f32.mrf.mxu3 }
 0x931   : > { %1421 = vrot.lane.b32.xlu2 %v1420_v41, %s2928_s2 }
 0x939   : > { %1617 = vrot.lane.b32.xlu2 %v1420_v41, %s2929_s4 }
 0x98c   : > { %v1374_v46 = vpop.xlane.xlu2 %1373 }
 0x98d   : > { %v1375_v47 = vsub.f32 %v1367_v43, %v1374_v46 }
 0x98f   : > { %v1376_v48 = vmul.f32 1.442695, %v1375_v47 }
 0x991   : > { %2207 = vpow2.f32 %v1376_v48 }
 0x994   : > { %v1422_v3 = vpop.permute.xlu2 %1421 }
 0x997   : > { %v2208_v49 = vpop.eup %2207 }
 0x998   : > { %v1378_v50 = vsel %vm1371_vm13, %v2208_v49, 0.0 }
 0x999   : > { %1379 = vadd.xlane.f32.xlu1 %v1378_v50 }
 0x99c   : > { %v1618_v15 = vpop.permute.xlu2 %1617 }
 0x9b2   : > { %1423 = vrot.lane.b32.xlu1 %v2660_v21, %s2928_s2  ;;  %s1863_s2 = scalar_lea.hbm %s2864_s23, %s2099_s26 }
 0x9ba   : > { %1619 = vrot.lane.b32.xlu1 %v2660_v21, %s2929_s4  ;;  %s2933_s4 = sshll.u32 %s2601_s30, 3 }
 0x9bb   : > { %s2736_s29 = scalar_lea.vmem [#allocation4], %s2933_s4 }
 0xa0c   : > { %v1380_v51 = vpop.xlane.xlu1 %1379 }
 0xa0d   : > { %2209 = vrcp.f32 %v1380_v51  ;;  %v1392_v57 = vand.u32 2147483648, %v1380_v51  ;;  %v1390_v27 = vand.u32 2147483647, %v1380_v51  ;;  %vm1386_vm15 = vweird.f32 %v1380_v51 }
 0xa0f   : > { %v1393_v59 = vor.u32 1.1754944e-38, %v1392_v57  ;;  %vm1391_vm2 = vcmp.eq.f32.partialorder %v1390_v27, 8.507059e+37 }
 0xa13   : > { %v2210_v54 = vpop.eup %2209 }
 0xa14   : > { %v1382_v55 = vmul.f32 %v2210_v54, %v1380_v51  ;;  %vm1387_vm14 = vweird.f32 %v2210_v54 }
 0xa15   : > { %vm1388_vm1 = vmor %vm1386_vm15, %vm1387_vm14 }
 0xa16   : > { %v1383_v56 = vsub.f32 1.0, %v1382_v55 }
 0xa18   : > { %v1384_v58 = vmul.f32 %v2210_v54, %v1383_v56 }
 0xa1a   : > { %v1385_v37 = vadd.f32 %v2210_v54, %v1384_v58 }
 0xa1c   : > { %v1389_v30 = vsel %vm1388_vm1, %v2210_v54, %v1385_v37 }
 0xa1d   : > { %v1394_v60 = vsel %vm1391_vm2, %v1393_v59, %v1389_v30 }
 0xa1e   : > { %v2696_v61 = vmul.f32 %v2208_v49, %v1394_v60 }
 0xa20   : > { %v1396_v62 = vpack.c.bf16 %v2696_v61, %v2696_v61 }
 0xa22   : > { %2060 = vmatmul.msk.bf16.vlgmr.msra.gmra.mxu2 %vm1371_vm13, %v1396_v62 }
 0xa24   : > { %v1424_v0 = vpop.permute.xlu1 %1423 }
 0xa25   : > { %v1429_v1 = vsel %vm864_vm5, %v1424_v0, 0 }
 0xa26   : > { %1438 = vmatpush.bf16.xpose.msra.mxu0 %v1429_v1 }
 0xa2c   : > { %v1620_v4 = vpop.permute.xlu1 %1619 }
 0xa2d   : > { %v1625_v6 = vsel %vm864_vm5, %v1620_v4, 0  ;;  %2061 = vmatmul.msk.bf16.vlgmr.msra.gmra.mxu0 %vm864_vm5, %v1422_v3 }
 0xa2e   : > { %1545 = vmatpush.bf16.xpose.msrb.mxu0 %v1536_v2  ;;  %1634 = vmatpush.bf16.xpose.msra.mxu2 %v1625_v6 }
 0xa3d   : > { %2065 = vmatmul.msk.bf16.vlgmr.msrb.gmra.mxu0 %vm864_vm5, %v1529_v7 }
 0xaa5   : > { %v1412_v9 = vpop.f32.mrf.mxu2 }
 0xaa6   : > { %v1416_v10 = vpack.c.bf16 %v1412_v9, %v1412_v9  ;;  %v1340_v9 = vld [vmem:[%s2855_s14 + $0x4] sm:$0xf] }
 0xaa8   : > { %2064 = vmatmul.msk.bf16.vlgmr.msrb.gmra.mxu2 %vm864_vm5, %v1416_v10  ;;  %v1493_v10 = vsel %vm914_vm6, %v1340_v9, 0  ;;  %v2182_v9 = vld [vmem:[%s2858_s17] ss:$0 sm:$0xff] }
 0xaa9   : > { %1502 = vmatpush.bf16.msra.mxu3 %v1493_v10 }
 0xaaa   : > { %v1440_v11 = vpop.f32.mrf.mxu0 }
 0xaab   : > { %v1444_v12 = vsel %vm1371_vm13, %v1440_v11, -inf }
 0xaac   : > { %1445 = vmax.xlane.f32.xlu1 %v1444_v12 }
 0xaad   : > { %v1414_v13 = vpop.f32.mrf.mxu2 }
 0xab2   : > { %v1442_v14 = vpop.f32.mrf.mxu0 }
 0xab8   : > { %2068 = vmatmul.msk.bf16.vlgmr.msra.gmra.mxu2 %vm864_vm5, %v1618_v15 }
 0xaba   : > { %v1547_v16 = vpop.f32.mrf.mxu0 }
 0xabb   : > { %v1551_v17 = vsel %vm1371_vm13, %v1547_v16, -inf }
 0xabc   : > { %1552 = vmax.xlane.f32.xlu0 %v1551_v17 }
 0xac2   : > { %v1549_v18 = vpop.f32.mrf.mxu0 }
 0xb1f   : > { %v1446_v19 = vpop.xlane.xlu1 %1445 }
 0xb20   : > { %v1447_v20 = vsub.f32 %v1440_v11, %v1446_v19 }
 0xb22   : > { %v1448_v22 = vmul.f32 1.442695, %v1447_v20 }
 0xb24   : > { %2211 = vpow2.f32 %v1448_v22 }
 0xb2a   : > { %v2212_v23 = vpop.eup %2211 }
 0xb2b   : > { %v2710_v24 = vpop.f32.mrf.mxu2  ;;  %v1450_v25 = vsel %vm1371_vm13, %v2212_v23, 0.0 }
 0xb2c   : > { %1451 = vadd.xlane.f32.xlu1 %v1450_v25 }
 0xb2f   : > { %v1553_v5 = vpop.xlane.xlu0 %1552 }
 0xb30   : > { %v1554_v26 = vsub.f32 %v1547_v16, %v1553_v5 }
 0xb32   : > { %v1555_v28 = vmul.f32 1.442695, %v1554_v26 }
 0xb33   : > { %v1525_v29 = vpop.f32.mrf.mxu2 }
 0xb34   : > { %2213 = vpow2.f32 %v1555_v28 }
 0xb3a   : > { %v2214_v31 = vpop.eup %2213 }
 0xb3b   : > { %v1636_v33 = vpop.f32.mrf.mxu2  ;;  %v1557_v34 = vsel %vm1371_vm13, %v2214_v31, 0.0 }
 0xb3c   : > { %1558 = vadd.xlane.f32.xlu0 %v1557_v34  ;;  %v1640_v35 = vsel %vm1371_vm13, %v1636_v33, -inf }
 0xb3d   : > { %1641 = vmax.xlane.f32.xlu2 %v1640_v35 }
 0xb43   : > { %v1638_v36 = vpop.f32.mrf.mxu2 }
 0xb50   : > { %1576 = vrot.lane.b32.xlu0 %v2660_v21, %s2930_s27  ;;  %s1877_s27 = scalar_lea.hbm %s2865_s24, %s2099_s26 }
 0xb55   : > { %1469 = vrot.lane.b32.xlu2 %v2660_v21, %s2931_s5  ;;  %s1865_s5 = sshll.u32 %s2608_s7, 4  ;;  %s1866_s5 = int_to_ptr.vmem [resolvable:$true] %s1865_s5 }
 0xb9f   : > { %v1452_v38 = vpop.xlane.xlu1 %1451 }
 0xba0   : > { %2215 = vrcp.f32 %v1452_v38  ;;  %v1464_v44 = vand.u32 2147483648, %v1452_v38  ;;  %vm1458_vm4 = vweird.f32 %v1452_v38  ;;  %v1462_v45 = vand.u32 2147483647, %v1452_v38 }
 0xba2   : > { %v1465_v49 = vor.u32 1.1754944e-38, %v1464_v44  ;;  %vm1463_vm8 = vcmp.eq.f32.partialorder %v1462_v45, 8.507059e+37 }
 0xba6   : > { %v2216_v39 = vpop.eup %2215 }
 0xba7   : > { %v1454_v40 = vmul.f32 %v2216_v39, %v1452_v38  ;;  %vm1459_vm3 = vweird.f32 %v2216_v39  ;;  %v1342_v38 = vld [vmem:[%s2855_s14 + $0xc] sm:$0xf] }
 0xba8   : > { %vm1460_vm7 = vmor %vm1458_vm4, %vm1459_vm3  ;;  %vm1819_vm3 = vcmask 523264  }
 0xba9   : > { %v1455_v41 = vsub.f32 1.0, %v1454_v40 }
 0xbab   : > { %v1456_v42 = vmul.f32 %v2216_v39, %v1455_v41 }
 0xbad   : > { %v1457_v43 = vadd.f32 %v2216_v39, %v1456_v42 }
 0xbaf   : > { %v1559_v46 = vpop.xlane.xlu0 %1558  ;;  %v1461_v47 = vsel %vm1460_vm7, %v2216_v39, %v1457_v43  ;;  %v1689_v39 = vsel %vm914_vm6, %v1342_v38, 0 }
 0xbb0   : > { %2217 = vrcp.f32 %v1559_v46  ;;  %v1642_v48 = vpop.xlane.xlu2 %1641  ;;  %v1466_v51 = vsel %vm1463_vm8, %v1465_v49, %v1461_v47  ;;  %v1571_v58 = vand.u32 2147483648, %v1559_v46  ;;  %v1569_v30 = vand.u32 2147483647, %v1559_v46  ;;  %v2180_v49 = vld [vmem:[%s2856_s15] ss:$0 sm:$0xff] }
 0xbb1   : > { %v1643_v50 = vsub.f32 %v1636_v33, %v1642_v48  ;;  %v1467_v54 = vmul.f32 %v2212_v23, %v1466_v51  ;;  %vm1565_vm10 = vweird.f32 %v1559_v46 }
 0xbb2   : > { %v1572_v63 = vor.u32 1.1754944e-38, %v1571_v58  ;;  %vm1570_vm12 = vcmp.eq.f32.partialorder %v1569_v30, 8.507059e+37 }
 0xbb3   : > { %v1644_v52 = vmul.f32 1.442695, %v1643_v50  ;;  %v1468_v27 = vpack.c.bf16 %v1467_v54, %v1467_v54  ;;  %v1527_v3 = vadd.f32 %v1467_v54, %v2696_v61  ;;  %v1341_v61 = vld [vmem:[%s2855_s14 + $0x8] sm:$0xf] }
 0xbb4   : > { %v1600_v11 = vsel %vm914_vm6, %v1341_v61, 0 }
 0xbb5   : > { %2219 = vpow2.f32 %v1644_v52  ;;  %1609 = vmatpush.bf16.msrb.mxu3 %v1600_v11 }
 0xbb6   : > { %v2218_v53 = vpop.eup %2217 }
 0xbb7   : > { %v1561_v55 = vmul.f32 %v2218_v53, %v1559_v46  ;;  %vm1566_vm9 = vweird.f32 %v2218_v53 }
 0xbb8   : > { %v1470_v56 = vpop.permute.xlu2 %1469  ;;  %vm1567_vm11 = vmor %vm1565_vm10, %vm1566_vm9 }
 0xbb9   : > { %v1562_v57 = vsub.f32 1.0, %v1561_v55  ;;  %1482 = vmatpush.bf16.msra.mxu1 %v1470_v56 }
 0xbbb   : > { %v2220_v37 = vpop.eup %2219  ;;  %v1563_v59 = vmul.f32 %v2218_v53, %v1562_v57 }
 0xbbc   : > { %2062 = vmatmul.msk.bf16.vlgmr.msra.gmra.mxu1 %vm1371_vm13, %v1468_v27  ;;  %v1646_v60 = vsel %vm1371_vm13, %v2220_v37, 0.0 }
 0xbbd   : > { %v1564_v62 = vadd.f32 %v2218_v53, %v1563_v59  ;;  %1647 = vadd.xlane.f32.xlu1 %v1646_v60  ;;  %v2115_v59 = vld [vmem:[%s2861_s20 + $0x18] sm:$0xff] }
 0xbbe   : > { %1827 = vmatpush.bf16.msrb.mxu2 %v2115_v59 }
 0xbbf   : > { %v1568_v0 = vsel %vm1567_vm11, %v2218_v53, %v1564_v62  ;;  %v2114_v62 = vld [vmem:[%s2861_s20 + $0x10] sm:$0xff] }
 0xbc0   : > { %v1573_v1 = vsel %vm1570_vm12, %v1572_v63, %v1568_v0 }
 0xbc1   : > { %v1574_v2 = vmul.f32 %v2214_v31, %v1573_v1 }
 0xbc2   : > { %v1577_v4 = vpop.permute.xlu0 %1576  ;;  %1828 = vmatpush.bf16.msrb.mxu2 %v2114_v62 }
 0xbc3   : > { %1589 = vmatpush.bf16.msrb.mxu1 %v1577_v4  ;;  %v1616_v6 = vadd.f32 %v1574_v2, %v1527_v3  ;;  %v1575_v7 = vpack.c.bf16 %v1574_v2, %v1574_v2 }
 0xbc7   : > { %1698 = vmatpush.bf16.msra.mxu1 %v1689_v39 }
 0xbcc   : > { %2066 = vmatmul.msk.bf16.vlgmr.msrb.gmra.mxu1 %vm1371_vm13, %v1575_v7 }
 0xbd6   : > { %1665 = vrot.lane.b32.xlu1 %v2660_v21, %s2932_s28  ;;  %s1867_s28 = sshll.u32 %s1863_s2, 4  ;;  %s1868_s28 = int_to_ptr.hbm [resolvable:$true] %s1867_s28 }
 0xbd7   : > { %s2239_s10 = sshra.s32 %s1868_s28, 4  ;;  %s2240_s10 = int_to_ptr.hbm [resolvable:$true] %s2239_s10 }
 0xbd8   : > { %s2241_s11 = scalar_lea.hbm %s2240_s10, 8  ;;  %p2246_p0 = scmp.lt.s32.totalorder %s2240_s10, %s2864_s23 }
 0xbd9   : > { %p2242_p11 = scmp.ne.s32.totalorder %s2240_s10, %s2241_s11  ;;  %p2247_p1 = scmp.lt.s32.totalorder %s2245_s1, %s2241_s11 }
 0xbdb   : > { %p2243_p12 = pnand %p2242_p11, %p2496_p5  ;;  %p2248_p2 = por %p2247_p1, %p2246_p0 }
 0xbdd   : > { %p2244_p13 = pneg %p2243_p12 }
 0xbdf   : > { %p2249_p3 = pnand %p2248_p2, %p2244_p13 }
 0xc30   : > { %v1648_v12 = vpop.xlane.xlu1 %1647 }
 0xc31   : > { %2221 = vrcp.f32 %v1648_v12  ;;  %v1660_v17 = vand.u32 2147483648, %v1648_v12  ;;  %v1658_v19 = vand.u32 2147483647, %v1648_v12  ;;  %vm1654_vm15 = vweird.f32 %v1648_v12 }
 0xc33   : > { %v1661_v22 = vor.u32 1.1754944e-38, %v1660_v17  ;;  %vm1659_vm2 = vcmp.eq.f32.partialorder %v1658_v19, 8.507059e+37 }
 0xc37   : > { %v2222_v13 = vpop.eup %2221 }
 0xc38   : > { %v1650_v14 = vmul.f32 %v2222_v13, %v1648_v12  ;;  %vm1655_vm14 = vweird.f32 %v2222_v13 }
 0xc39   : > { %v1484_v15 = vpop.f32.mrf.mxu1  ;;  %vm1656_vm1 = vmor %vm1654_vm15, %vm1655_vm14 }
 0xc3a   : > { %v1651_v21 = vsub.f32 1.0, %v1650_v14  ;;  %v1488_v16 = vpack.c.bf16 %v1484_v15, %v1484_v15  ;;  %v2112_v14 = vld [vmem:[%s2861_s20] sm:$0xff] }
 0xc3b   : > { %v2183_v15 = vld [vmem:[%s2860_s19] ss:$0 sm:$0xff] }
 0xc3c   : > { %v1652_v18 = vmul.f32 %v2222_v13, %v1651_v21  ;;  %2063 = vmatmul.msk.bf16.vlgmr.msra.gmra.mxu3 %vm864_vm5, %v1488_v16 }
 0xc3e   : > { %v1653_v20 = vadd.f32 %v2222_v13, %v1652_v18 }
 0xc40   : > { %v1657_v23 = vsel %vm1656_vm1, %v2222_v13, %v1653_v20  ;;  %v2113_v13 = vld [vmem:[%s2861_s20 + $0x8] sm:$0xff] }
 0xc41   : > { %v1662_v25 = vsel %vm1659_vm2, %v1661_v22, %v1657_v23  ;;  %v1486_v5 = vpop.f32.mrf.mxu1  ;;  %1829 = vmatpush.bf16.msrb.mxu2 %v2113_v13 }
 0xc42   : > { %v1663_v26 = vmul.f32 %v2220_v37, %v1662_v25  ;;  %v2111_v37 = vld [vmem:[%s2859_s18 + $0x8] sm:$0xff] }
 0xc43   : > { %1774 = vmatpush.bf16.msra.mxu3 %v2111_v37 }
 0xc44   : > { %v1705_v28 = vadd.f32 %v1663_v26, %v1616_v6  ;;  %v1664_v35 = vpack.c.bf16 %v1663_v26, %v1663_v26 }
 0xc45   : > { %1830 = vmatpush.bf16.msrb.mxu2 %v2112_v14 }
 0xc46   : > { %v1710_v29 = vmul.f32 0.25, %v1705_v28 }
 0xc48   : > { %v1666_v31 = vpop.permute.xlu1 %1665  ;;  %1839 = vst.msk [vmem:[%s2736_s29] sm:$0xff] %vm1371_vm13, %v1710_v29 }
 0xc49   : > { %v1591_v33 = vpop.f32.mrf.mxu1  ;;  %1678 = vmatpush.bf16.msra.mxu0 %v1666_v31 }
 0xc4a   : > { %v1595_v34 = vpack.c.bf16 %v1591_v33, %v1591_v33 }
 0xc4c   : > { %2067 = vmatmul.msk.bf16.vlgmr.msrb.gmra.mxu3 %vm864_vm5, %v1595_v34  ;;  %2069 = vmatmul.msk.bf16.vlgmr.msra.gmra.mxu0 %vm1371_vm13, %v1664_v35 }
 0xc51   : > { %v1593_v36 = vpop.f32.mrf.mxu1 }
 0xcbf   : > { %v1504_v40 = vpop.f32.mrf.mxu3 }
 0xcc0   : > { %v1524_v44 = vadd.f32 %v2710_v24, %v1504_v40 }
 0xcc7   : > { %v1506_v41 = vpop.f32.mrf.mxu3 }
 0xcc9   : > { %v1680_v42 = vpop.f32.mrf.mxu0 }
 0xcca   : > { %v1684_v43 = vpack.c.bf16 %v1680_v42, %v1680_v42 }
 0xccc   : > { %2070 = vmatmul.msk.bf16.vlgmr.msra.gmra.mxu1 %vm864_vm5, %v1684_v43 }
 0xccf   : > { %v1611_v45 = vpop.f32.mrf.mxu3 }
 0xcd0   : > { %v1615_v46 = vadd.f32 %v1611_v45, %v1524_v44 }
 0xcd1   : > { %v1682_v47 = vpop.f32.mrf.mxu0 }
 0xcd7   : > { %v1613_v48 = vpop.f32.mrf.mxu3 }
 0xd49   : > { %v1700_v50 = vpop.f32.mrf.mxu1 }
 0xd4a   : > { %v1704_v51 = vadd.f32 %v1700_v50, %v1615_v46 }
 0xd4c   : > { %v1709_v52 = vadd.f32 %v2180_v49, %v1704_v51 }
 0xd4e   : > { %v1711_v53 = vadd.f32 %v1709_v52, %v2674_v32  ;;  %v2110_v32 = vld [vmem:[%s2859_s18] sm:$0xff] }
 0xd4f   : > { %1775 = vmatpush.bf16.msra.mxu3 %v2110_v32 }
 0xd50   : > { %v1714_v54 = vsel %vm778_vm0, %v1711_v53, 0.0 }
 0xd51   : > { %v1702_v55 = vpop.f32.mrf.mxu1  ;;  %1715 = vadd.xlane.f32.xlu2 %v1714_v54 }
 0xdc4   : > { %v1716_v56 = vpop.xlane.xlu2 %1715 }
 0xdc5   : > { %v1717_v24 = vmul.f32 %v1716_v56, %v2517_v8 }
 0xdc7   : > { %v1718_v57 = vsub.f32 %v1711_v53, %v1717_v24 }
 0xdc9   : > { %v1719_v58 = vmul.f32 %v1718_v57, %v1718_v57 }
 0xdcb   : > { %v1720_v27 = vsel %vm778_vm0, %v1719_v58, 0.0 }
 0xdcc   : > { %1721 = vadd.xlane.f32.xlu0 %v1720_v27 }
 0xe3f   : > { %v1722_v30 = vpop.xlane.xlu0 %1721 }
 0xe40   : > { %v1723_v60 = vmul.f32 %v1722_v30, %v2517_v8  ;;  %v2181_v8 = vld [vmem:[%s2857_s16] ss:$0 sm:$0xff] }
 0xe42   : > { %v1724_v63 = vadd.f32 1e-05, %v1723_v60 }
 0xe44   : > { %2223 = vrsqrt.f32 %v1724_v63  ;;  %vm1731_vm6 = vweird.f32 %v1724_v63 }
 0xe4a   : > { %v2224_v0 = vpop.eup %2223 }
 0xe4b   : > { %v1726_v1 = vmul.f32 %v2224_v0, %v1724_v63  ;;  %vm1732_vm5 = vweird.f32 %v2224_v0 }
 0xe4c   : > { %vm1733_vm13 = vmor %vm1731_vm6, %vm1732_vm5 }
 0xe4d   : > { %v1727_v2 = vmul.f32 %v2224_v0, %v1726_v1 }
 0xe4f   : > { %v1728_v3 = vmul.f32 0.5, %v1727_v2 }
 0xe51   : > { %v1729_v4 = vsub.f32 1.5, %v1728_v3 }
 0xe53   : > { %v1730_v6 = vmul.f32 %v2224_v0, %v1729_v4 }
 0xe55   : > { %v1734_v7 = vsel %vm1733_vm13, %v2224_v0, %v1730_v6 }
 0xe56   : > { %v1735_v10 = vmul.f32 %v1734_v7, %v1718_v57 }
 0xe58   : > { %v1739_v61 = vmul.f32 %v2181_v8, %v1735_v10 }
 0xe5a   : > { %v1743_v11 = vadd.f32 %v2182_v9, %v1739_v61 }
 0xe5c   : > { %v1744_v12 = vpack.c.bf16 %v1743_v11, %v1743_v11 }
 0xe5e   : > { %2079 = vmatmul.msk.bf16.vlgmr.msra.gmra.mxu3 %vm778_vm0, %v1744_v12 }
 0xee1   : > { %v1777_v21 = vpop.f32.mrf.mxu3 }
 0xee2   : > { %v1778_v16 = vadd.f32 %v2183_v15, %v1777_v21 }
 0xee4   : > { %v1781_v17 = vmax.f32 %v1778_v16, 0.0 }
 0xee6   : > { %v1782_v18 = vpack.c.bf16 %v1781_v17, %v1781_v17 }
 0xee8   : > { %2096 = vmatmul.msk.bf16.vlgmr.msrb.gmra.mxu2 %vm1819_vm3, %v1782_v18 }
 0xee9   : > { %v1779_v19 = vpop.f32.mrf.mxu3 }
 0xeea   : > { %2252 = shalt.err (!%p2249_p3)
}
 0xeeb   : > { %2116 = dma.vmem_to_hbm [thread:$0]  (%p2496_p5), %s1866_s5, 128, %s1868_s28, %s1845_s9  }
 0xeec   : > { %s1879_s7 = sshll.u32 %s2736_s29, 4  ;;  %s1881_s26 = sshll.u32 %s1877_s27, 4  ;;  %s1880_s7 = int_to_ptr.vmem [resolvable:$true] %s1879_s7  ;;  %s1882_s26 = int_to_ptr.hbm [resolvable:$true] %s1881_s26 }
 0xeed   : > { %s1850_s12 = scalar_lea.sflag [#allocation5], %s2601_s30  ;;  %s2267_s2 = sshra.s32 %s1882_s26, 4  ;;  %s2268_s2 = int_to_ptr.hbm [resolvable:$true] %s2267_s2 }
 0xeee   : > { %s2269_s4 = scalar_lea.hbm %s2268_s2, 8  ;;  %s2273_s13 = scalar_lea.hbm %s2865_s24, 16 }
 0xeef   : > { %p2270_p4 = scmp.ne.s32.totalorder %s2268_s2, %s2269_s4  ;;  %p2274_p9 = scmp.lt.s32.totalorder %s2268_s2, %s2865_s24 }
 0xef0   : > { %p2275_p10 = scmp.lt.s32.totalorder %s2273_s13, %s2269_s4 }
 0xef1   : > { %p2271_p7 = pnand %p2270_p4, %p2496_p5 }
 0xef2   : > { %p2276_p11 = por %p2275_p10, %p2274_p9 }
 0xef3   : > { %p2272_p8 = pneg %p2271_p7 }
 0xef5   : > { %p2277_p12 = pnand %p2276_p11, %p2272_p8 }
 0xef7   : > { %2280 = shalt.err (!%p2277_p12)
}
 0xef8   : > { %2117 = dma.vmem_to_hbm [thread:$0]  (%p2496_p5), %s1880_s7, 128, %s1882_s26, %s1850_s12   ;;  %v2184_v20 = vld [vmem:[%s2862_s21] ss:$0 sm:$0xff] }
 0xef9   : > { %s2934_s29 = sshll.u32 %s2508_s8, 3 }
 0xefa   : > { %s773_s28 = scalar_lea.vmem %s2863_s22, %s2934_s29 }
 0xf6b   : > { %v1832_v22 = vpop.f32.mrf.mxu2 }
 0xf6c   : > { %v1833_v23 = vadd.f32 %v2184_v20, %v1832_v22 }
 0xf6e   : > { %v1836_v25 = vadd.f32 %v1833_v23, %v1743_v11 }
 0xf70   : > { %1837 = vst.msk [vmem:[%s773_s28] sm:$0xff] %vm778_vm0, %v1836_v25 }
 0xf73   : > { %v1834_v5 = vpop.f32.mrf.mxu2 }
 0xf74 PF: > { %s2935_s1 = sld [smem:[#allocation11_spill]] }
 0xf75   : > { %s2936_s3 = sld [smem:[#allocation8_spill]] }
 0xf7a   : > { %p2127_p5 = scmp.ge.s32.totalorder %s2935_s1, 2 }
 0xf7b   : > { %s1900_s7 = sand.u32 1, %s2936_s3  }
 0xf7c   : > { %p2121_p13 = pnand %p2127_p5, %p2500_p6  ;;  %s1901_s26 = scalar_lea.sflag [#allocation3], %s1900_s7 }
 0xf7e   : > { %p2122_p0 = pneg %p2121_p13 }
 0xf80   : > { %2298 = dma.done.wait (%p2122_p0), %s1901_s26, 128  }
 0xf81   : > { %2300 = vsyncadd (%p2122_p0), %s1901_s26, 4294967168  ;;  %s1911_s8 = scalar_lea.sflag [#allocation5], %s1900_s7 }
 0xf82   : > { %2302 = dma.done.wait (%p2122_p0), %s1911_s8, 128  }
 0xf83   : > { %2304 = vsyncadd (%p2122_p0), %s1911_s8, 4294967168  ;;  %s2938_s28 = sld [smem:[#allocation12_spill]] }
 0xf84   : > { %s2939_s5 = sld [smem:[#allocation9_spill]] }
 0xf85   : > { %s2940_s26 = sld [smem:[#allocation10_spill]] }
 0xf86   : > { %s2941_s27 = sld [smem:[#allocation13_spill]] }
 0xf89   : > { %p38_p1 = scmp.ge.s32.totalorder %s2938_s28, 4  }
 0xf8b   :  { %40 = sbr.rel (!%p38_p1) target bundleno = 20 (0x14), region = 175 }
 0xf90   :  { %1917 = vsyncpa [#allocation3], 1 }
 0xf91   :  { %1919 = vsyncpa [#allocation3 + $0x1], 1 }
 0xf92   :  { %1920 = vsyncpa [#allocation5], 1 }
 0xf93   :  { %1922 = vsyncpa [#allocation5 + $0x1], 1 }

</bundles_post_ra>
